<compile_context>
chip_gen: v7x
topology: tpu7x:2x2x1
jax: 0.10.0
libtpu: 0.0.40
codegen_flags: <defaults>
</compile_context>

<pallas_src>
import functools

import jax
import jax.numpy as jnp
from jax import lax
from jax.experimental import pallas as pl
from jax.experimental.pallas import tpu as pltpu

F32 = jnp.float32
BF16 = jnp.bfloat16
LN_EPS = 1e-5                                   # nn.LayerNorm default eps
NEG_INF = float(jnp.finfo(jnp.float32).min)     # HF mask fill value


# ---------------------------------------------------------------------------
# small helpers
# ---------------------------------------------------------------------------
def _round_up(x, m):
    return ((x + m - 1) // m) * m


def _mm_nt(a, b):
    """a:(M,K) . b:(N,K)^T -> (M,N)  f32 accumulation (MXU)."""
    return lax.dot_general(a, b, (((1,), (1,)), ((), ())),
                           preferred_element_type=F32)


def _mm_nn(a, b):
    """a:(M,K) . b:(K,N) -> (M,N)  f32 accumulation (MXU)."""
    return lax.dot_general(a, b, (((1,), (0,)), ((), ())),
                           preferred_element_type=F32)


def _layer_norm(x, g, b):
    mu = jnp.mean(x, axis=-1, keepdims=True)
    var = jnp.mean(jnp.square(x - mu), axis=-1, keepdims=True)
    return (x - mu) * lax.rsqrt(var + LN_EPS) * g + b


def _full_spec(shape):
    n = len(shape)
    return pl.BlockSpec(shape, lambda *_: (0,) * n)


def _mosaic_params(dims):
    kwargs = dict(dimension_semantics=dims)
    try:  # explicit VMEM budget (75% of physical), safe fallback to default
        cap = int(pltpu.get_tpu_info().vmem_capacity_bytes)
        kwargs["vmem_limit_bytes"] = (cap * 3) // 4
    except Exception:
        pass
    return pltpu.CompilerParams(**kwargs)


# ---------------------------------------------------------------------------
# fused transformer-XL layer: rel. multi-head attention + post-LN + FFN + post-LN
# grid = (batch, query_tiles); K/V come from the full (padded) sequence.
# ---------------------------------------------------------------------------
def _layer_kernel(xq_ref, xkv_ref, posq_ref, posk_ref,
                  wq_ref, wkv_ref, wr_ref, wo_ref, rwb_ref, rrb_ref,
                  ln1g_ref, ln1b_ref, w1_ref, b1_ref, w2_ref, b2_ref,
                  ln2g_ref, ln2b_ref, o_ref, *, n_head, d_head):
    xq = xq_ref[0]                                 # (tq, D) f32 query rows
    xkv = xkv_ref[0]                               # (Tp, D) f32 full key/value rows
    tq, d = xq.shape
    tp = xkv.shape[0]
    d2 = d // 2
    scale = 1.0 / float(d_head) ** 0.5

    # fused lane-dense projections (one D-wide and one 2D-wide MXU matmul)
    q_all = _mm_nt(xq.astype(BF16), wq_ref[...])       # (tq, D)  f32
    kv_all = _mm_nt(xkv.astype(BF16), wkv_ref[...])    # (Tp, 2D) f32
    k_all = kv_all[:, :d].astype(BF16)
    v_all = kv_all[:, d:].astype(BF16)

    rwq_all = (q_all + rwb_ref[...]).astype(BF16)      # + r_w_bias (content)
    rrq_all = q_all + rrb_ref[...]                     # + r_r_bias (position), f32

    si_q = posq_ref[...][:, :d2]                       # sin(i*w) at query rows
    ci_q = posq_ref[...][:, d2:]                       # cos(i*w) at query rows
    posk = posk_ref[...]                               # (Tp, D) bf16 = [cos | sin] at keys

    q0 = pl.program_id(1) * tq
    row = q0 + lax.broadcasted_iota(jnp.int32, (tq, tp), 0)
    col = lax.broadcasted_iota(jnp.int32, (tq, tp), 1)
    future = col > row                                 # causal mask (also hides seq padding)

    ctx_heads = []
    for h in range(n_head):                            # static unroll over heads
        s0 = h * d_head
        s1 = s0 + d_head
        k_h = k_all[:, s0:s1]
        v_h = v_all[:, s0:s1]

        # content term AC
        ac = _mm_nt(rwq_all[:, s0:s1], k_h)            # (tq, Tp) f32

        # position term BD via the angle-difference identity (exact on j<=i,
        # masked positions j>i are overwritten with NEG_INF anyway):
        #   BD[i,j] = us[i]·sin((i-j)w) + uc[i]·cos((i-j)w)
        u = _mm_nn(rrq_all[:, s0:s1].astype(BF16), wr_ref[h])   # (tq, D) f32
        us, uc = u[:, :d2], u[:, d2:]
        pq = jnp.concatenate([us * si_q + uc * ci_q,
                              uc * si_q - us * ci_q], axis=-1).astype(BF16)
        bd = _mm_nt(pq, posk)                          # (tq, Tp) f32, full-D contraction

        score = (ac + bd) * scale
        score = jnp.where(future, NEG_INF, score)
        m = jnp.max(score, axis=-1, keepdims=True)
        e = jnp.exp(score - m)
        p = e / jnp.sum(e, axis=-1, keepdims=True)     # exact softmax (no approx recip)
        ctx_heads.append(_mm_nn(p.astype(BF16), v_h))  # (tq, dh) f32

    # fused o_net across heads: one (tq,D)x(D,D) matmul
    ctx = jnp.concatenate(ctx_heads, axis=-1).astype(BF16)      # (tq, D)
    attn_out = _mm_nt(ctx, wo_ref[...])                # (tq, D) f32

    h1 = _layer_norm(xq + attn_out, ln1g_ref[...], ln1b_ref[...])

    # PositionwiseFF: Linear -> ReLU -> Linear, residual + post-LayerNorm
    a1 = jnp.maximum(_mm_nt(h1.astype(BF16), w1_ref[...]) + b1_ref[...], 0.0)
    y = _mm_nt(a1.astype(BF16), w2_ref[...]) + b2_ref[...]
    o_ref[0] = _layer_norm(h1 + y, ln2g_ref[...], ln2b_ref[...])


def layer_block(x, lp, pos_q, pos_k, tq, n_head, d_head):
    b, t_pad, d = x.shape
    grid = (b, t_pad // tq)
    operands = (x, x, pos_q, pos_k,
                lp["wq"], lp["wkv"], lp["wr"], lp["wo"], lp["rwb"], lp["rrb"],
                lp["ln1_g"], lp["ln1_b"], lp["w1"], lp["b1"],
                lp["w2"], lp["b2"], lp["ln2_g"], lp["ln2_b"])
    in_specs = [
        pl.BlockSpec((1, tq, d), lambda bi, qi: (bi, qi, 0)),    # x, query tile
        pl.BlockSpec((1, t_pad, d), lambda bi, qi: (bi, 0, 0)),  # x, full (K/V source)
        pl.BlockSpec((tq, d), lambda bi, qi: (qi, 0)),           # [sin|cos] at query rows
        pl.BlockSpec((t_pad, d), lambda bi, qi: (0, 0)),         # [cos|sin] at key rows
    ] + [_full_spec(op.shape) for op in operands[4:]]
    kern = functools.partial(_layer_kernel, n_head=n_head, d_head=d_head)
    return pl.pallas_call(
        kern,
        out_shape=jax.ShapeDtypeStruct((b, t_pad, d), F32),
        grid=grid,
        in_specs=in_specs,
        out_specs=pl.BlockSpec((1, tq, d), lambda bi, qi: (bi, qi, 0)),
        compiler_params=_mosaic_params(("parallel", "parallel")),
    )(*operands)


# ---------------------------------------------------------------------------
# LM head: tied-embedding logits + log_softmax over V (+1 zero cluster class),
# two passes tiled over (rows, vocab) with an online (flash-style) LSE.
# ---------------------------------------------------------------------------
def _lse_kernel(h_ref, e_ref, bias_ref, lse_ref, m_sc, l_sc):
    j = pl.program_id(1)

    @pl.when(j == 0)
    def _():
        m_sc[...] = jnp.full_like(m_sc, -jnp.inf)
        l_sc[...] = jnp.zeros_like(l_sc)

    logits = _mm_nt(h_ref[...], e_ref[...]) + bias_ref[...]
    m_new = jnp.maximum(m_sc[...], jnp.max(logits, axis=-1, keepdims=True))
    alpha = jnp.exp(m_sc[...] - m_new)
    l_sc[...] = alpha * l_sc[...] + jnp.sum(jnp.exp(logits - m_new),
                                            axis=-1, keepdims=True)
    m_sc[...] = m_new

    @pl.when(j == pl.num_programs(1) - 1)
    def _():
        m = m_sc[...]
        # extra class from cluster_weight/cluster_bias (both zero) -> logit 0
        lse_ref[...] = m + jnp.log(l_sc[...] + jnp.exp(-m))


def _logprob_kernel(h_ref, e_ref, bias_ref, lse_ref, o_ref):
    logits = _mm_nt(h_ref[...], e_ref[...]) + bias_ref[...]
    o_ref[...] = logits - lse_ref[...]


def head_log_probs(h_bf, emb_bf, bias_pad, tv, v_real):
    n, d = h_bf.shape
    v_pad = emb_bf.shape[0]
    tm = 512 if n >= 512 else _round_up(n, 16)
    n_pad = _round_up(n, tm)
    if n_pad != n:
        h_bf = jnp.pad(h_bf, ((0, n_pad - n), (0, 0)))
    grid = (n_pad // tm, v_pad // tv)

    lse = pl.pallas_call(
        _lse_kernel,
        out_shape=jax.ShapeDtypeStruct((n_pad, 1), F32),
        grid=grid,
        in_specs=[pl.BlockSpec((tm, d), lambda i, j: (i, 0)),
                  pl.BlockSpec((tv, d), lambda i, j: (j, 0)),
                  pl.BlockSpec((1, tv), lambda i, j: (0, j))],
        out_specs=pl.BlockSpec((tm, 1), lambda i, j: (i, 0)),
        scratch_shapes=[pltpu.VMEM((tm, 1), F32), pltpu.VMEM((tm, 1), F32)],
        compiler_params=_mosaic_params(("parallel", "arbitrary")),
    )(h_bf, emb_bf, bias_pad)

    logp = pl.pallas_call(
        _logprob_kernel,
        out_shape=jax.ShapeDtypeStruct((n_pad, v_pad), F32),
        grid=grid,
        in_specs=[pl.BlockSpec((tm, d), lambda i, j: (i, 0)),
                  pl.BlockSpec((tv, d), lambda i, j: (j, 0)),
                  pl.BlockSpec((1, tv), lambda i, j: (0, j)),
                  pl.BlockSpec((tm, 1), lambda i, j: (i, 0))],
        out_specs=pl.BlockSpec((tm, tv), lambda i, j: (i, j)),
        compiler_params=_mosaic_params(("parallel", "parallel")),
    )(h_bf, emb_bf, bias_pad, lse)

    return logp[:n, :v_real]


# ---------------------------------------------------------------------------
# one-time parameter preparation (hoisted out of forward, per review)
# ---------------------------------------------------------------------------
def prepare_params(params):
    cfg = dict(params["config"])
    d, n_head, d_head = cfg["d_model"], cfg["n_head"], cfg["d_head"]
    v = cfg["vocab_size"]

    layers = []
    for lp in params["layers"]:
        wq = lp["wq"].reshape(n_head * d_head, d)
        wk = lp["wk"].reshape(n_head * d_head, d)
        wv = lp["wv"].reshape(n_head * d_head, d)
        layers.append(dict(
            wq=wq.astype(BF16),                                           # (D, D)
            wkv=jnp.concatenate([wk, wv], axis=0).astype(BF16),           # (2D, D)
            wr=lp["wr"].astype(BF16),                                     # (H, dh, D)
            wo=jnp.transpose(lp["wo"], (1, 0, 2))
                 .reshape(d, n_head * d_head).astype(BF16),               # (D, D)
            rwb=lp["r_w_bias"].reshape(1, n_head * d_head).astype(F32),
            rrb=lp["r_r_bias"].reshape(1, n_head * d_head).astype(F32),
            ln1_g=lp["ln1_g"], ln1_b=lp["ln1_b"],
            w1=lp["w1"].astype(BF16), b1=lp["b1"],
            w2=lp["w2"].astype(BF16), b2=lp["b2"],
            ln2_g=lp["ln2_g"], ln2_b=lp["ln2_b"],
        ))

    # LM head: pad vocab to a lane-dense tile multiple; padded columns get a
    # -1e30 bias so they contribute nothing to the log-softmax denominator.
    tv = 512 if v >= 512 else _round_up(v, 128)
    v_pad = _round_up(v, tv)
    emb_bf = jnp.zeros((v_pad, d), BF16).at[:v].set(params["emb"].astype(BF16))
    bias_pad = jnp.full((1, v_pad), -1e30, F32).at[:, :v].set(params["out_bias"])

    return dict(config=cfg, emb=params["emb"], layers=layers,
                head_emb=emb_bf, head_bias=bias_pad, head_tv=tv)


# ---------------------------------------------------------------------------
# model forward (glue in plain JAX, hot paths in Pallas)
# ---------------------------------------------------------------------------
def weird_calculator_forward(prep, input_ids):
    """Transformer-XL LM head model forward -> log-probs (batch, seq, vocab)."""
    cfg = prep["config"]
    d, n_head, d_head = cfg["d_model"], cfg["n_head"], cfg["d_head"]
    b, t = input_ids.shape

    # embedding gather in XLA (review-sanctioned) + AdaptiveEmbedding sqrt(d) scale
    h = jnp.take(prep["emb"], input_ids, axis=0) * (float(d) ** 0.5)   # (B,T,D) f32

    # pad seq to a query-tile multiple (padded keys are causally masked,
    # padded query rows stay finite and are dropped before the head)
    tq = 256 if t > 256 else _round_up(t, 8)
    t_pad = _round_up(t, tq)
    if t_pad != t:
        h = jnp.pad(h, ((0, 0), (0, t_pad - t), (0, 0)))

    # sinusoid basis at absolute positions (batch/layer invariant); the layer
    # kernel reconstructs PE(i-j) exactly from it (no rel_shift tensor).
    pos = jnp.arange(t_pad, dtype=F32)
    inv_freq = 1.0 / (10000.0 ** (jnp.arange(0, d, 2, dtype=F32) / d))
    ang = pos[:, None] * inv_freq[None, :]                     # (Tp, D/2)
    si, ci = jnp.sin(ang), jnp.cos(ang)
    pos_q = jnp.concatenate([si, ci], axis=-1)                 # (Tp, D) f32
    pos_k = jnp.concatenate([ci, si], axis=-1).astype(BF16)    # (Tp, D) bf16

    for lp in prep["layers"]:
        h = layer_block(h, lp, pos_q, pos_k, tq, n_head, d_head)

    h = h[:, :t, :].reshape(b * t, d).astype(BF16)             # drop seq padding
    logp = head_log_probs(h, prep["head_emb"], prep["head_bias"],
                          prep["head_tv"], cfg["vocab_size"])
    return logp.reshape(b, t, cfg["vocab_size"])


# ---------------------------------------------------------------------------
# deterministic synthetic parameters (shapes follow WeirdCalculator.__init__)
# ---------------------------------------------------------------------------
def init_params(key, vocab_size, d_model, n_head, d_inner, n_layer, init_std=0.02):
    assert d_model % n_head == 0 and d_model % 2 == 0
    d_head = d_model // n_head

    def nrm(k, shape, std=init_std):
        return (std * jax.random.normal(k, shape)).astype(F32)

    keys = jax.random.split(key, 1 + n_layer)
    params = {
        "config": {"d_model": d_model, "n_head": n_head, "d_head": d_head,
                   "d_inner": d_inner, "vocab_size": vocab_size, "n_layer": n_layer},
        "emb": nrm(keys[0], (vocab_size, d_model)),            # tied in/out embedding
        "out_bias": jnp.zeros((1, vocab_size), F32),
        "layers": [],
    }
    for layer in range(n_layer):
        lk = jax.random.split(keys[1 + layer], 9)
        params["layers"].append({
            # qkv_net / r_net / o_net weights, pre-split per head (parameter glue)
            "wq": nrm(lk[0], (n_head, d_head, d_model)),
            "wk": nrm(lk[1], (n_head, d_head, d_model)),
            "wv": nrm(lk[2], (n_head, d_head, d_model)),
            "wr": nrm(lk[3], (n_head, d_head, d_model)),
            "wo": nrm(lk[4], (n_head, d_model, d_head)),
            "r_w_bias": nrm(lk[5], (n_head, 1, d_head)),       # untie_r -> per layer
            "r_r_bias": nrm(lk[6], (n_head, 1, d_head)),
            "ln1_g": jnp.ones((1, d_model), F32),
            "ln1_b": jnp.zeros((1, d_model), F32),
            "w1": nrm(lk[7], (d_inner, d_model)),
            "b1": jnp.zeros((1, d_inner), F32),
            "w2": nrm(lk[8], (d_model, d_inner)),
            "b2": jnp.zeros((1, d_model), F32),
            "ln2_g": jnp.ones((1, d_model), F32),
            "ln2_b": jnp.zeros((1, d_model), F32),
        })
    return params


# ---------------------------------------------------------------------------
if __name__ == "__main__":
    # small, module-consistent config: WeirdCalculator(vocab_size=128, d_model=64,
    # n_head=4, d_inner=128, n_layer=2); input_ids: (batch=2, seq=8)
    vocab_size, d_model, n_head, d_inner, n_layer = 128, 64, 4, 128, 2
    batch, seq = 2, 8

    key = jax.random.PRNGKey(0)
    pkey, dkey = jax.random.split(key)
    params = init_params(pkey, vocab_size, d_model, n_head, d_inner, n_layer)
    prep = prepare_params(params)          # one-time weight prep (hoisted out of forward)
    input_ids = jax.random.randint(dkey, (batch, seq), 0, vocab_size, dtype=jnp.int32)

    out = weird_calculator_forward(prep, input_ids)
    out = jax.block_until_ready(out)

    assert out.shape == (batch, seq, vocab_size)
    assert bool(jnp.all(jnp.isfinite(out)))
    print("KERNEL_OK")
</pallas_src>

<mosaic_0001>
module attributes {stable_mosaic.version = 11 : i64} {
  func.func @_layer_kernel(%arg0: i32, %arg1: i32, %arg2: memref<1x8x64xf32, #tpu.memory_space<vmem>>, %arg3: memref<1x8x64xf32, #tpu.memory_space<vmem>>, %arg4: memref<8x64xf32, #tpu.memory_space<vmem>>, %arg5: memref<8x64xbf16, #tpu.memory_space<vmem>>, %arg6: memref<64x64xbf16, #tpu.memory_space<vmem>>, %arg7: memref<128x64xbf16, #tpu.memory_space<vmem>>, %arg8: memref<4x16x64xbf16, #tpu.memory_space<vmem>>, %arg9: memref<64x64xbf16, #tpu.memory_space<vmem>>, %arg10: memref<1x64xf32, #tpu.memory_space<vmem>>, %arg11: memref<1x64xf32, #tpu.memory_space<vmem>>, %arg12: memref<1x64xf32, #tpu.memory_space<vmem>>, %arg13: memref<1x64xf32, #tpu.memory_space<vmem>>, %arg14: memref<128x64xbf16, #tpu.memory_space<vmem>>, %arg15: memref<1x128xf32, #tpu.memory_space<vmem>>, %arg16: memref<64x128xbf16, #tpu.memory_space<vmem>>, %arg17: memref<1x64xf32, #tpu.memory_space<vmem>>, %arg18: memref<1x64xf32, #tpu.memory_space<vmem>>, %arg19: memref<1x64xf32, #tpu.memory_space<vmem>>, %arg20: memref<1x8x64xf32, #tpu.memory_space<vmem>>) attributes {dimension_semantics = [#tpu.dimension_semantics<parallel>, #tpu.dimension_semantics<parallel>], iteration_bounds = array<i64: 2, 1>, scalar_prefetch = 0 : i64, scratch_operands = 0 : i64, tpu.core_type = #tpu.core_type<tc>, window_params = [{transform_indices = @transform_0, window_bounds = array<i64: 1, 8, 64>}, {transform_indices = @transform_1, window_bounds = array<i64: 1, 8, 64>}, {transform_indices = @transform_2, window_bounds = array<i64: 8, 64>}, {pipeline_mode = #tpu.pipeline_mode<synchronous>, transform_indices = @transform_3, window_bounds = array<i64: 8, 64>}, {pipeline_mode = #tpu.pipeline_mode<synchronous>, transform_indices = @transform_4, window_bounds = array<i64: 64, 64>}, {pipeline_mode = #tpu.pipeline_mode<synchronous>, transform_indices = @transform_5, window_bounds = array<i64: 128, 64>}, {pipeline_mode = #tpu.pipeline_mode<synchronous>, transform_indices = @transform_6, window_bounds = array<i64: 4, 16, 64>}, {pipeline_mode = #tpu.pipeline_mode<synchronous>, transform_indices = @transform_7, window_bounds = array<i64: 64, 64>}, {pipeline_mode = #tpu.pipeline_mode<synchronous>, transform_indices = @transform_8, window_bounds = array<i64: 1, 64>}, {pipeline_mode = #tpu.pipeline_mode<synchronous>, transform_indices = @transform_9, window_bounds = array<i64: 1, 64>}, {pipeline_mode = #tpu.pipeline_mode<synchronous>, transform_indices = @transform_10, window_bounds = array<i64: 1, 64>}, {pipeline_mode = #tpu.pipeline_mode<synchronous>, transform_indices = @transform_11, window_bounds = array<i64: 1, 64>}, {pipeline_mode = #tpu.pipeline_mode<synchronous>, transform_indices = @transform_12, window_bounds = array<i64: 128, 64>}, {pipeline_mode = #tpu.pipeline_mode<synchronous>, transform_indices = @transform_13, window_bounds = array<i64: 1, 128>}, {pipeline_mode = #tpu.pipeline_mode<synchronous>, transform_indices = @transform_14, window_bounds = array<i64: 64, 128>}, {pipeline_mode = #tpu.pipeline_mode<synchronous>, transform_indices = @transform_15, window_bounds = array<i64: 1, 64>}, {pipeline_mode = #tpu.pipeline_mode<synchronous>, transform_indices = @transform_16, window_bounds = array<i64: 1, 64>}, {pipeline_mode = #tpu.pipeline_mode<synchronous>, transform_indices = @transform_17, window_bounds = array<i64: 1, 64>}, {transform_indices = @transform_18, window_bounds = array<i64: 1, 8, 64>}]} {
    %c0 = arith.constant 0 : index
    %c0_0 = arith.constant 0 : index
    %c0_1 = arith.constant 0 : index
    %0 = vector.load %arg2[%c0, %c0_0, %c0_1] : memref<1x8x64xf32, #tpu.memory_space<vmem>>, vector<1x8x64xf32>
    %1 = vector.shape_cast %0 : vector<1x8x64xf32> to vector<8x64xf32>
    %c0_2 = arith.constant 0 : index
    %c0_3 = arith.constant 0 : index
    %c0_4 = arith.constant 0 : index
    %2 = vector.load %arg3[%c0_2, %c0_3, %c0_4] : memref<1x8x64xf32, #tpu.memory_space<vmem>>, vector<1x8x64xf32>
    %3 = vector.shape_cast %2 : vector<1x8x64xf32> to vector<8x64xf32>
    %4 = arith.truncf %1 : vector<8x64xf32> to vector<8x64xbf16>
    %c0_5 = arith.constant 0 : index
    %c0_6 = arith.constant 0 : index
    %5 = vector.load %arg6[%c0_5, %c0_6] : memref<64x64xbf16, #tpu.memory_space<vmem>>, vector<64x64xbf16>
    %cst = arith.constant dense<0.000000e+00> : vector<8x64xf32>
    %6 = tpu.matmul %4, %5, %cst {dimension_numbers = #tpu.dot_dimension_numbers<[1], [1], [0], [0], [0, 0, 1, 0], [], []>} : vector<8x64xbf16>, vector<64x64xbf16>, vector<8x64xf32> -> vector<8x64xf32>
    %7 = arith.truncf %3 : vector<8x64xf32> to vector<8x64xbf16>
    %c0_7 = arith.constant 0 : index
    %c0_8 = arith.constant 0 : index
    %8 = vector.load %arg7[%c0_7, %c0_8] : memref<128x64xbf16, #tpu.memory_space<vmem>>, vector<128x64xbf16>
    %cst_9 = arith.constant dense<0.000000e+00> : vector<8x128xf32>
    %9 = tpu.matmul %7, %8, %cst_9 {dimension_numbers = #tpu.dot_dimension_numbers<[1], [1], [0], [0], [0, 0, 1, 0], [], []>} : vector<8x64xbf16>, vector<128x64xbf16>, vector<8x128xf32> -> vector<8x128xf32>
    %10 = vector.extract_strided_slice %9 {offsets = [0, 0], sizes = [8, 64], strides = [1, 1]} : vector<8x128xf32> to vector<8x64xf32>
    %11 = arith.truncf %10 : vector<8x64xf32> to vector<8x64xbf16>
    %12 = vector.extract_strided_slice %9 {offsets = [0, 64], sizes = [8, 64], strides = [1, 1]} : vector<8x128xf32> to vector<8x64xf32>
    %13 = arith.truncf %12 : vector<8x64xf32> to vector<8x64xbf16>
    %c0_10 = arith.constant 0 : index
    %c0_11 = arith.constant 0 : index
    %14 = vector.load %arg10[%c0_10, %c0_11] : memref<1x64xf32, #tpu.memory_space<vmem>>, vector<1x64xf32>
    %15 = vector.broadcast %14 : vector<1x64xf32> to vector<8x64xf32>
    %16 = arith.addf %6, %15 : vector<8x64xf32>
    %17 = arith.truncf %16 : vector<8x64xf32> to vector<8x64xbf16>
    %c0_12 = arith.constant 0 : index
    %c0_13 = arith.constant 0 : index
    %18 = vector.load %arg11[%c0_12, %c0_13] : memref<1x64xf32, #tpu.memory_space<vmem>>, vector<1x64xf32>
    %19 = vector.broadcast %18 : vector<1x64xf32> to vector<8x64xf32>
    %20 = arith.addf %6, %19 : vector<8x64xf32>
    %c0_14 = arith.constant 0 : index
    %c0_15 = arith.constant 0 : index
    %21 = vector.load %arg4[%c0_14, %c0_15] : memref<8x64xf32, #tpu.memory_space<vmem>>, vector<8x64xf32>
    %22 = vector.extract_strided_slice %21 {offsets = [0, 0], sizes = [8, 32], strides = [1, 1]} : vector<8x64xf32> to vector<8x32xf32>
    %c0_16 = arith.constant 0 : index
    %c0_17 = arith.constant 0 : index
    %23 = vector.load %arg4[%c0_16, %c0_17] : memref<8x64xf32, #tpu.memory_space<vmem>>, vector<8x64xf32>
    %24 = vector.extract_strided_slice %23 {offsets = [0, 32], sizes = [8, 32], strides = [1, 1]} : vector<8x64xf32> to vector<8x32xf32>
    %c0_18 = arith.constant 0 : index
    %c0_19 = arith.constant 0 : index
    %25 = vector.load %arg5[%c0_18, %c0_19] : memref<8x64xbf16, #tpu.memory_space<vmem>>, vector<8x64xbf16>
    %c8_i32 = arith.constant 8 : i32
    %26 = arith.muli %arg1, %c8_i32 : i32
    %27 = tpu.iota {dimensions = array<i32: 0>} : vector<8x8xi32>
    %28 = vector.broadcast %26 : i32 to vector<8x8xi32>
    %29 = arith.addi %28, %27 : vector<8x8xi32>
    %30 = tpu.iota {dimensions = array<i32: 1>} : vector<8x8xi32>
    %31 = arith.cmpi sgt, %30, %29 : vector<8x8xi32>
    %32 = vector.extract_strided_slice %11 {offsets = [0, 0], sizes = [8, 16], strides = [1, 1]} : vector<8x64xbf16> to vector<8x16xbf16>
    %33 = vector.extract_strided_slice %13 {offsets = [0, 0], sizes = [8, 16], strides = [1, 1]} : vector<8x64xbf16> to vector<8x16xbf16>
    %34 = vector.extract_strided_slice %17 {offsets = [0, 0], sizes = [8, 16], strides = [1, 1]} : vector<8x64xbf16> to vector<8x16xbf16>
    %cst_20 = arith.constant dense<0.000000e+00> : vector<8x8xf32>
    %35 = tpu.matmul %34, %32, %cst_20 {dimension_numbers = #tpu.dot_dimension_numbers<[1], [1], [0], [0], [0, 0, 1, 0], [], []>} : vector<8x16xbf16>, vector<8x16xbf16>, vector<8x8xf32> -> vector<8x8xf32>
    %36 = vector.extract_strided_slice %20 {offsets = [0, 0], sizes = [8, 16], strides = [1, 1]} : vector<8x64xf32> to vector<8x16xf32>
    %37 = arith.truncf %36 : vector<8x16xf32> to vector<8x16xbf16>
    %c0_21 = arith.constant 0 : index
    %c0_22 = arith.constant 0 : index
    %c0_23 = arith.constant 0 : index
    %38 = vector.load %arg8[%c0_21, %c0_22, %c0_23] : memref<4x16x64xbf16, #tpu.memory_space<vmem>>, vector<1x16x64xbf16>
    %39 = vector.shape_cast %38 : vector<1x16x64xbf16> to vector<16x64xbf16>
    %cst_24 = arith.constant dense<0.000000e+00> : vector<8x64xf32>
    %40 = tpu.matmul %37, %39, %cst_24 {dimension_numbers = #tpu.dot_dimension_numbers<[1], [0], [0], [1], [0, 0, 1, 1], [], []>} : vector<8x16xbf16>, vector<16x64xbf16>, vector<8x64xf32> -> vector<8x64xf32>
    %41 = vector.extract_strided_slice %40 {offsets = [0, 0], sizes = [8, 32], strides = [1, 1]} : vector<8x64xf32> to vector<8x32xf32>
    %42 = vector.extract_strided_slice %40 {offsets = [0, 32], sizes = [8, 32], strides = [1, 1]} : vector<8x64xf32> to vector<8x32xf32>
    %43 = arith.mulf %41, %22 : vector<8x32xf32>
    %44 = arith.mulf %42, %24 : vector<8x32xf32>
    %45 = arith.addf %43, %44 : vector<8x32xf32>
    %46 = arith.mulf %42, %22 : vector<8x32xf32>
    %47 = arith.mulf %41, %24 : vector<8x32xf32>
    %48 = arith.subf %46, %47 : vector<8x32xf32>
    %49 = tpu.concatenate %45, %48 in 1 : vector<8x32xf32>, vector<8x32xf32> -> vector<8x64xf32>
    %50 = arith.truncf %49 : vector<8x64xf32> to vector<8x64xbf16>
    %cst_25 = arith.constant dense<0.000000e+00> : vector<8x8xf32>
    %51 = tpu.matmul %50, %25, %cst_25 {dimension_numbers = #tpu.dot_dimension_numbers<[1], [1], [0], [0], [0, 0, 1, 0], [], []>} : vector<8x64xbf16>, vector<8x64xbf16>, vector<8x8xf32> -> vector<8x8xf32>
    %52 = arith.addf %35, %51 : vector<8x8xf32>
    %cst_26 = arith.constant 2.500000e-01 : f32
    %53 = vector.broadcast %cst_26 : f32 to vector<8x8xf32>
    %54 = arith.mulf %52, %53 : vector<8x8xf32>
    %cst_27 = arith.constant -3.40282347E+38 : f32
    %55 = vector.broadcast %cst_27 : f32 to vector<8x8xf32>
    %56 = arith.select %31, %55, %54 : vector<8x8xi1>, vector<8x8xf32>
    %cst_28 = arith.constant dense<0xFF800000> : vector<8xf32>
    %57 = vector.multi_reduction <maximumf>, %56, %cst_28 [1] : vector<8x8xf32> to vector<8xf32>
    %58 = vector.shape_cast %57 : vector<8xf32> to vector<8x1xf32>
    %59 = vector.broadcast %58 : vector<8x1xf32> to vector<8x8xf32>
    %60 = arith.subf %56, %59 : vector<8x8xf32>
    %61 = math.exp %60 : vector<8x8xf32>
    %cst_29 = arith.constant dense<0.000000e+00> : vector<8xf32>
    %62 = vector.multi_reduction <add>, %61, %cst_29 [1] : vector<8x8xf32> to vector<8xf32>
    %63 = vector.shape_cast %62 : vector<8xf32> to vector<8x1xf32>
    %64 = vector.broadcast %63 : vector<8x1xf32> to vector<8x8xf32>
    %65 = arith.divf %61, %64 : vector<8x8xf32>
    %66 = arith.truncf %65 : vector<8x8xf32> to vector<8x8xbf16>
    %cst_30 = arith.constant dense<0.000000e+00> : vector<8x16xf32>
    %67 = tpu.matmul %66, %33, %cst_30 {dimension_numbers = #tpu.dot_dimension_numbers<[1], [0], [0], [1], [0, 0, 1, 1], [], []>} : vector<8x8xbf16>, vector<8x16xbf16>, vector<8x16xf32> -> vector<8x16xf32>
    %68 = vector.extract_strided_slice %11 {offsets = [0, 16], sizes = [8, 16], strides = [1, 1]} : vector<8x64xbf16> to vector<8x16xbf16>
    %69 = vector.extract_strided_slice %13 {offsets = [0, 16], sizes = [8, 16], strides = [1, 1]} : vector<8x64xbf16> to vector<8x16xbf16>
    %70 = vector.extract_strided_slice %17 {offsets = [0, 16], sizes = [8, 16], strides = [1, 1]} : vector<8x64xbf16> to vector<8x16xbf16>
    %cst_31 = arith.constant dense<0.000000e+00> : vector<8x8xf32>
    %71 = tpu.matmul %70, %68, %cst_31 {dimension_numbers = #tpu.dot_dimension_numbers<[1], [1], [0], [0], [0, 0, 1, 0], [], []>} : vector<8x16xbf16>, vector<8x16xbf16>, vector<8x8xf32> -> vector<8x8xf32>
    %72 = vector.extract_strided_slice %20 {offsets = [0, 16], sizes = [8, 16], strides = [1, 1]} : vector<8x64xf32> to vector<8x16xf32>
    %73 = arith.truncf %72 : vector<8x16xf32> to vector<8x16xbf16>
    %c1 = arith.constant 1 : index
    %c0_32 = arith.constant 0 : index
    %c0_33 = arith.constant 0 : index
    %74 = vector.load %arg8[%c1, %c0_32, %c0_33] : memref<4x16x64xbf16, #tpu.memory_space<vmem>>, vector<1x16x64xbf16>
    %75 = vector.shape_cast %74 : vector<1x16x64xbf16> to vector<16x64xbf16>
    %cst_34 = arith.constant dense<0.000000e+00> : vector<8x64xf32>
    %76 = tpu.matmul %73, %75, %cst_34 {dimension_numbers = #tpu.dot_dimension_numbers<[1], [0], [0], [1], [0, 0, 1, 1], [], []>} : vector<8x16xbf16>, vector<16x64xbf16>, vector<8x64xf32> -> vector<8x64xf32>
    %77 = vector.extract_strided_slice %76 {offsets = [0, 0], sizes = [8, 32], strides = [1, 1]} : vector<8x64xf32> to vector<8x32xf32>
    %78 = vector.extract_strided_slice %76 {offsets = [0, 32], sizes = [8, 32], strides = [1, 1]} : vector<8x64xf32> to vector<8x32xf32>
    %79 = arith.mulf %77, %22 : vector<8x32xf32>
    %80 = arith.mulf %78, %24 : vector<8x32xf32>
    %81 = arith.addf %79, %80 : vector<8x32xf32>
    %82 = arith.mulf %78, %22 : vector<8x32xf32>
    %83 = arith.mulf %77, %24 : vector<8x32xf32>
    %84 = arith.subf %82, %83 : vector<8x32xf32>
    %85 = tpu.concatenate %81, %84 in 1 : vector<8x32xf32>, vector<8x32xf32> -> vector<8x64xf32>
    %86 = arith.truncf %85 : vector<8x64xf32> to vector<8x64xbf16>
    %cst_35 = arith.constant dense<0.000000e+00> : vector<8x8xf32>
    %87 = tpu.matmul %86, %25, %cst_35 {dimension_numbers = #tpu.dot_dimension_numbers<[1], [1], [0], [0], [0, 0, 1, 0], [], []>} : vector<8x64xbf16>, vector<8x64xbf16>, vector<8x8xf32> -> vector<8x8xf32>
    %88 = arith.addf %71, %87 : vector<8x8xf32>
    %cst_36 = arith.constant 2.500000e-01 : f32
    %89 = vector.broadcast %cst_36 : f32 to vector<8x8xf32>
    %90 = arith.mulf %88, %89 : vector<8x8xf32>
    %cst_37 = arith.constant -3.40282347E+38 : f32
    %91 = vector.broadcast %cst_37 : f32 to vector<8x8xf32>
    %92 = arith.select %31, %91, %90 : vector<8x8xi1>, vector<8x8xf32>
    %cst_38 = arith.constant dense<0xFF800000> : vector<8xf32>
    %93 = vector.multi_reduction <maximumf>, %92, %cst_38 [1] : vector<8x8xf32> to vector<8xf32>
    %94 = vector.shape_cast %93 : vector<8xf32> to vector<8x1xf32>
    %95 = vector.broadcast %94 : vector<8x1xf32> to vector<8x8xf32>
    %96 = arith.subf %92, %95 : vector<8x8xf32>
    %97 = math.exp %96 : vector<8x8xf32>
    %cst_39 = arith.constant dense<0.000000e+00> : vector<8xf32>
    %98 = vector.multi_reduction <add>, %97, %cst_39 [1] : vector<8x8xf32> to vector<8xf32>
    %99 = vector.shape_cast %98 : vector<8xf32> to vector<8x1xf32>
    %100 = vector.broadcast %99 : vector<8x1xf32> to vector<8x8xf32>
    %101 = arith.divf %97, %100 : vector<8x8xf32>
    %102 = arith.truncf %101 : vector<8x8xf32> to vector<8x8xbf16>
    %cst_40 = arith.constant dense<0.000000e+00> : vector<8x16xf32>
    %103 = tpu.matmul %102, %69, %cst_40 {dimension_numbers = #tpu.dot_dimension_numbers<[1], [0], [0], [1], [0, 0, 1, 1], [], []>} : vector<8x8xbf16>, vector<8x16xbf16>, vector<8x16xf32> -> vector<8x16xf32>
    %104 = vector.extract_strided_slice %11 {offsets = [0, 32], sizes = [8, 16], strides = [1, 1]} : vector<8x64xbf16> to vector<8x16xbf16>
    %105 = vector.extract_strided_slice %13 {offsets = [0, 32], sizes = [8, 16], strides = [1, 1]} : vector<8x64xbf16> to vector<8x16xbf16>
    %106 = vector.extract_strided_slice %17 {offsets = [0, 32], sizes = [8, 16], strides = [1, 1]} : vector<8x64xbf16> to vector<8x16xbf16>
    %cst_41 = arith.constant dense<0.000000e+00> : vector<8x8xf32>
    %107 = tpu.matmul %106, %104, %cst_41 {dimension_numbers = #tpu.dot_dimension_numbers<[1], [1], [0], [0], [0, 0, 1, 0], [], []>} : vector<8x16xbf16>, vector<8x16xbf16>, vector<8x8xf32> -> vector<8x8xf32>
    %108 = vector.extract_strided_slice %20 {offsets = [0, 32], sizes = [8, 16], strides = [1, 1]} : vector<8x64xf32> to vector<8x16xf32>
    %109 = arith.truncf %108 : vector<8x16xf32> to vector<8x16xbf16>
    %c2 = arith.constant 2 : index
    %c0_42 = arith.constant 0 : index
    %c0_43 = arith.constant 0 : index
    %110 = vector.load %arg8[%c2, %c0_42, %c0_43] : memref<4x16x64xbf16, #tpu.memory_space<vmem>>, vector<1x16x64xbf16>
    %111 = vector.shape_cast %110 : vector<1x16x64xbf16> to vector<16x64xbf16>
    %cst_44 = arith.constant dense<0.000000e+00> : vector<8x64xf32>
    %112 = tpu.matmul %109, %111, %cst_44 {dimension_numbers = #tpu.dot_dimension_numbers<[1], [0], [0], [1], [0, 0, 1, 1], [], []>} : vector<8x16xbf16>, vector<16x64xbf16>, vector<8x64xf32> -> vector<8x64xf32>
    %113 = vector.extract_strided_slice %112 {offsets = [0, 0], sizes = [8, 32], strides = [1, 1]} : vector<8x64xf32> to vector<8x32xf32>
    %114 = vector.extract_strided_slice %112 {offsets = [0, 32], sizes = [8, 32], strides = [1, 1]} : vector<8x64xf32> to vector<8x32xf32>
    %115 = arith.mulf %113, %22 : vector<8x32xf32>
    %116 = arith.mulf %114, %24 : vector<8x32xf32>
    %117 = arith.addf %115, %116 : vector<8x32xf32>
    %118 = arith.mulf %114, %22 : vector<8x32xf32>
    %119 = arith.mulf %113, %24 : vector<8x32xf32>
    %120 = arith.subf %118, %119 : vector<8x32xf32>
    %121 = tpu.concatenate %117, %120 in 1 : vector<8x32xf32>, vector<8x32xf32> -> vector<8x64xf32>
    %122 = arith.truncf %121 : vector<8x64xf32> to vector<8x64xbf16>
    %cst_45 = arith.constant dense<0.000000e+00> : vector<8x8xf32>
    %123 = tpu.matmul %122, %25, %cst_45 {dimension_numbers = #tpu.dot_dimension_numbers<[1], [1], [0], [0], [0, 0, 1, 0], [], []>} : vector<8x64xbf16>, vector<8x64xbf16>, vector<8x8xf32> -> vector<8x8xf32>
    %124 = arith.addf %107, %123 : vector<8x8xf32>
    %cst_46 = arith.constant 2.500000e-01 : f32
    %125 = vector.broadcast %cst_46 : f32 to vector<8x8xf32>
    %126 = arith.mulf %124, %125 : vector<8x8xf32>
    %cst_47 = arith.constant -3.40282347E+38 : f32
    %127 = vector.broadcast %cst_47 : f32 to vector<8x8xf32>
    %128 = arith.select %31, %127, %126 : vector<8x8xi1>, vector<8x8xf32>
    %cst_48 = arith.constant dense<0xFF800000> : vector<8xf32>
    %129 = vector.multi_reduction <maximumf>, %128, %cst_48 [1] : vector<8x8xf32> to vector<8xf32>
    %130 = vector.shape_cast %129 : vector<8xf32> to vector<8x1xf32>
    %131 = vector.broadcast %130 : vector<8x1xf32> to vector<8x8xf32>
    %132 = arith.subf %128, %131 : vector<8x8xf32>
    %133 = math.exp %132 : vector<8x8xf32>
    %cst_49 = arith.constant dense<0.000000e+00> : vector<8xf32>
    %134 = vector.multi_reduction <add>, %133, %cst_49 [1] : vector<8x8xf32> to vector<8xf32>
    %135 = vector.shape_cast %134 : vector<8xf32> to vector<8x1xf32>
    %136 = vector.broadcast %135 : vector<8x1xf32> to vector<8x8xf32>
    %137 = arith.divf %133, %136 : vector<8x8xf32>
    %138 = arith.truncf %137 : vector<8x8xf32> to vector<8x8xbf16>
    %cst_50 = arith.constant dense<0.000000e+00> : vector<8x16xf32>
    %139 = tpu.matmul %138, %105, %cst_50 {dimension_numbers = #tpu.dot_dimension_numbers<[1], [0], [0], [1], [0, 0, 1, 1], [], []>} : vector<8x8xbf16>, vector<8x16xbf16>, vector<8x16xf32> -> vector<8x16xf32>
    %140 = vector.extract_strided_slice %11 {offsets = [0, 48], sizes = [8, 16], strides = [1, 1]} : vector<8x64xbf16> to vector<8x16xbf16>
    %141 = vector.extract_strided_slice %13 {offsets = [0, 48], sizes = [8, 16], strides = [1, 1]} : vector<8x64xbf16> to vector<8x16xbf16>
    %142 = vector.extract_strided_slice %17 {offsets = [0, 48], sizes = [8, 16], strides = [1, 1]} : vector<8x64xbf16> to vector<8x16xbf16>
    %cst_51 = arith.constant dense<0.000000e+00> : vector<8x8xf32>
    %143 = tpu.matmul %142, %140, %cst_51 {dimension_numbers = #tpu.dot_dimension_numbers<[1], [1], [0], [0], [0, 0, 1, 0], [], []>} : vector<8x16xbf16>, vector<8x16xbf16>, vector<8x8xf32> -> vector<8x8xf32>
    %144 = vector.extract_strided_slice %20 {offsets = [0, 48], sizes = [8, 16], strides = [1, 1]} : vector<8x64xf32> to vector<8x16xf32>
    %145 = arith.truncf %144 : vector<8x16xf32> to vector<8x16xbf16>
    %c3 = arith.constant 3 : index
    %c0_52 = arith.constant 0 : index
    %c0_53 = arith.constant 0 : index
    %146 = vector.load %arg8[%c3, %c0_52, %c0_53] : memref<4x16x64xbf16, #tpu.memory_space<vmem>>, vector<1x16x64xbf16>
    %147 = vector.shape_cast %146 : vector<1x16x64xbf16> to vector<16x64xbf16>
    %cst_54 = arith.constant dense<0.000000e+00> : vector<8x64xf32>
    %148 = tpu.matmul %145, %147, %cst_54 {dimension_numbers = #tpu.dot_dimension_numbers<[1], [0], [0], [1], [0, 0, 1, 1], [], []>} : vector<8x16xbf16>, vector<16x64xbf16>, vector<8x64xf32> -> vector<8x64xf32>
    %149 = vector.extract_strided_slice %148 {offsets = [0, 0], sizes = [8, 32], strides = [1, 1]} : vector<8x64xf32> to vector<8x32xf32>
    %150 = vector.extract_strided_slice %148 {offsets = [0, 32], sizes = [8, 32], strides = [1, 1]} : vector<8x64xf32> to vector<8x32xf32>
    %151 = arith.mulf %149, %22 : vector<8x32xf32>
    %152 = arith.mulf %150, %24 : vector<8x32xf32>
    %153 = arith.addf %151, %152 : vector<8x32xf32>
    %154 = arith.mulf %150, %22 : vector<8x32xf32>
    %155 = arith.mulf %149, %24 : vector<8x32xf32>
    %156 = arith.subf %154, %155 : vector<8x32xf32>
    %157 = tpu.concatenate %153, %156 in 1 : vector<8x32xf32>, vector<8x32xf32> -> vector<8x64xf32>
    %158 = arith.truncf %157 : vector<8x64xf32> to vector<8x64xbf16>
    %cst_55 = arith.constant dense<0.000000e+00> : vector<8x8xf32>
    %159 = tpu.matmul %158, %25, %cst_55 {dimension_numbers = #tpu.dot_dimension_numbers<[1], [1], [0], [0], [0, 0, 1, 0], [], []>} : vector<8x64xbf16>, vector<8x64xbf16>, vector<8x8xf32> -> vector<8x8xf32>
    %160 = arith.addf %143, %159 : vector<8x8xf32>
    %cst_56 = arith.constant 2.500000e-01 : f32
    %161 = vector.broadcast %cst_56 : f32 to vector<8x8xf32>
    %162 = arith.mulf %160, %161 : vector<8x8xf32>
    %cst_57 = arith.constant -3.40282347E+38 : f32
    %163 = vector.broadcast %cst_57 : f32 to vector<8x8xf32>
    %164 = arith.select %31, %163, %162 : vector<8x8xi1>, vector<8x8xf32>
    %cst_58 = arith.constant dense<0xFF800000> : vector<8xf32>
    %165 = vector.multi_reduction <maximumf>, %164, %cst_58 [1] : vector<8x8xf32> to vector<8xf32>
    %166 = vector.shape_cast %165 : vector<8xf32> to vector<8x1xf32>
    %167 = vector.broadcast %166 : vector<8x1xf32> to vector<8x8xf32>
    %168 = arith.subf %164, %167 : vector<8x8xf32>
    %169 = math.exp %168 : vector<8x8xf32>
    %cst_59 = arith.constant dense<0.000000e+00> : vector<8xf32>
    %170 = vector.multi_reduction <add>, %169, %cst_59 [1] : vector<8x8xf32> to vector<8xf32>
    %171 = vector.shape_cast %170 : vector<8xf32> to vector<8x1xf32>
    %172 = vector.broadcast %171 : vector<8x1xf32> to vector<8x8xf32>
    %173 = arith.divf %169, %172 : vector<8x8xf32>
    %174 = arith.truncf %173 : vector<8x8xf32> to vector<8x8xbf16>
    %cst_60 = arith.constant dense<0.000000e+00> : vector<8x16xf32>
    %175 = tpu.matmul %174, %141, %cst_60 {dimension_numbers = #tpu.dot_dimension_numbers<[1], [0], [0], [1], [0, 0, 1, 1], [], []>} : vector<8x8xbf16>, vector<8x16xbf16>, vector<8x16xf32> -> vector<8x16xf32>
    %176 = tpu.concatenate %67, %103, %139, %175 in 1 : vector<8x16xf32>, vector<8x16xf32>, vector<8x16xf32>, vector<8x16xf32> -> vector<8x64xf32>
    %177 = arith.truncf %176 : vector<8x64xf32> to vector<8x64xbf16>
    %c0_61 = arith.constant 0 : index
    %c0_62 = arith.constant 0 : index
    %178 = vector.load %arg9[%c0_61, %c0_62] : memref<64x64xbf16, #tpu.memory_space<vmem>>, vector<64x64xbf16>
    %cst_63 = arith.constant dense<0.000000e+00> : vector<8x64xf32>
    %179 = tpu.matmul %177, %178, %cst_63 {dimension_numbers = #tpu.dot_dimension_numbers<[1], [1], [0], [0], [0, 0, 1, 0], [], []>} : vector<8x64xbf16>, vector<64x64xbf16>, vector<8x64xf32> -> vector<8x64xf32>
    %180 = arith.addf %1, %179 : vector<8x64xf32>
    %c0_64 = arith.constant 0 : index
    %c0_65 = arith.constant 0 : index
    %181 = vector.load %arg12[%c0_64, %c0_65] : memref<1x64xf32, #tpu.memory_space<vmem>>, vector<1x64xf32>
    %c0_66 = arith.constant 0 : index
    %c0_67 = arith.constant 0 : index
    %182 = vector.load %arg13[%c0_66, %c0_67] : memref<1x64xf32, #tpu.memory_space<vmem>>, vector<1x64xf32>
    %cst_68 = arith.constant dense<0.000000e+00> : vector<8xf32>
    %183 = vector.multi_reduction <add>, %180, %cst_68 [1] : vector<8x64xf32> to vector<8xf32>
    %184 = vector.shape_cast %183 : vector<8xf32> to vector<8x1xf32>
    %cst_69 = arith.constant 6.400000e+01 : f32
    %185 = vector.broadcast %cst_69 : f32 to vector<8x1xf32>
    %186 = arith.divf %184, %185 : vector<8x1xf32>
    %187 = vector.broadcast %186 : vector<8x1xf32> to vector<8x64xf32>
    %188 = arith.subf %180, %187 : vector<8x64xf32>
    %189 = arith.mulf %188, %188 : vector<8x64xf32>
    %cst_70 = arith.constant dense<0.000000e+00> : vector<8xf32>
    %190 = vector.multi_reduction <add>, %189, %cst_70 [1] : vector<8x64xf32> to vector<8xf32>
    %191 = vector.shape_cast %190 : vector<8xf32> to vector<8x1xf32>
    %cst_71 = arith.constant 6.400000e+01 : f32
    %192 = vector.broadcast %cst_71 : f32 to vector<8x1xf32>
    %193 = arith.divf %191, %192 : vector<8x1xf32>
    %194 = vector.broadcast %186 : vector<8x1xf32> to vector<8x64xf32>
    %195 = arith.subf %180, %194 : vector<8x64xf32>
    %cst_72 = arith.constant 9.99999974E-6 : f32
    %196 = vector.broadcast %cst_72 : f32 to vector<8x1xf32>
    %197 = arith.addf %193, %196 : vector<8x1xf32>
    %198 = math.rsqrt %197 : vector<8x1xf32>
    %199 = vector.broadcast %198 : vector<8x1xf32> to vector<8x64xf32>
    %200 = arith.mulf %195, %199 : vector<8x64xf32>
    %201 = vector.broadcast %181 : vector<1x64xf32> to vector<8x64xf32>
    %202 = arith.mulf %200, %201 : vector<8x64xf32>
    %203 = vector.broadcast %182 : vector<1x64xf32> to vector<8x64xf32>
    %204 = arith.addf %202, %203 : vector<8x64xf32>
    %205 = arith.truncf %204 : vector<8x64xf32> to vector<8x64xbf16>
    %c0_73 = arith.constant 0 : index
    %c0_74 = arith.constant 0 : index
    %206 = vector.load %arg14[%c0_73, %c0_74] : memref<128x64xbf16, #tpu.memory_space<vmem>>, vector<128x64xbf16>
    %cst_75 = arith.constant dense<0.000000e+00> : vector<8x128xf32>
    %207 = tpu.matmul %205, %206, %cst_75 {dimension_numbers = #tpu.dot_dimension_numbers<[1], [1], [0], [0], [0, 0, 1, 0], [], []>} : vector<8x64xbf16>, vector<128x64xbf16>, vector<8x128xf32> -> vector<8x128xf32>
    %c0_76 = arith.constant 0 : index
    %c0_77 = arith.constant 0 : index
    %208 = vector.load %arg15[%c0_76, %c0_77] : memref<1x128xf32, #tpu.memory_space<vmem>>, vector<1x128xf32>
    %209 = vector.broadcast %208 : vector<1x128xf32> to vector<8x128xf32>
    %210 = arith.addf %207, %209 : vector<8x128xf32>
    %cst_78 = arith.constant 0.000000e+00 : f32
    %211 = vector.broadcast %cst_78 : f32 to vector<8x128xf32>
    %212 = arith.maximumf %210, %211 : vector<8x128xf32>
    %213 = arith.truncf %212 : vector<8x128xf32> to vector<8x128xbf16>
    %c0_79 = arith.constant 0 : index
    %c0_80 = arith.constant 0 : index
    %214 = vector.load %arg16[%c0_79, %c0_80] : memref<64x128xbf16, #tpu.memory_space<vmem>>, vector<64x128xbf16>
    %cst_81 = arith.constant dense<0.000000e+00> : vector<8x64xf32>
    %215 = tpu.matmul %213, %214, %cst_81 {dimension_numbers = #tpu.dot_dimension_numbers<[1], [1], [0], [0], [0, 0, 1, 0], [], []>} : vector<8x128xbf16>, vector<64x128xbf16>, vector<8x64xf32> -> vector<8x64xf32>
    %c0_82 = arith.constant 0 : index
    %c0_83 = arith.constant 0 : index
    %216 = vector.load %arg17[%c0_82, %c0_83] : memref<1x64xf32, #tpu.memory_space<vmem>>, vector<1x64xf32>
    %217 = vector.broadcast %216 : vector<1x64xf32> to vector<8x64xf32>
    %218 = arith.addf %215, %217 : vector<8x64xf32>
    %219 = arith.addf %204, %218 : vector<8x64xf32>
    %c0_84 = arith.constant 0 : index
    %c0_85 = arith.constant 0 : index
    %220 = vector.load %arg18[%c0_84, %c0_85] : memref<1x64xf32, #tpu.memory_space<vmem>>, vector<1x64xf32>
    %c0_86 = arith.constant 0 : index
    %c0_87 = arith.constant 0 : index
    %221 = vector.load %arg19[%c0_86, %c0_87] : memref<1x64xf32, #tpu.memory_space<vmem>>, vector<1x64xf32>
    %cst_88 = arith.constant dense<0.000000e+00> : vector<8xf32>
    %222 = vector.multi_reduction <add>, %219, %cst_88 [1] : vector<8x64xf32> to vector<8xf32>
    %223 = vector.shape_cast %222 : vector<8xf32> to vector<8x1xf32>
    %cst_89 = arith.constant 6.400000e+01 : f32
    %224 = vector.broadcast %cst_89 : f32 to vector<8x1xf32>
    %225 = arith.divf %223, %224 : vector<8x1xf32>
    %226 = vector.broadcast %225 : vector<8x1xf32> to vector<8x64xf32>
    %227 = arith.subf %219, %226 : vector<8x64xf32>
    %228 = arith.mulf %227, %227 : vector<8x64xf32>
    %cst_90 = arith.constant dense<0.000000e+00> : vector<8xf32>
    %229 = vector.multi_reduction <add>, %228, %cst_90 [1] : vector<8x64xf32> to vector<8xf32>
    %230 = vector.shape_cast %229 : vector<8xf32> to vector<8x1xf32>
    %cst_91 = arith.constant 6.400000e+01 : f32
    %231 = vector.broadcast %cst_91 : f32 to vector<8x1xf32>
    %232 = arith.divf %230, %231 : vector<8x1xf32>
    %233 = vector.broadcast %225 : vector<8x1xf32> to vector<8x64xf32>
    %234 = arith.subf %219, %233 : vector<8x64xf32>
    %cst_92 = arith.constant 9.99999974E-6 : f32
    %235 = vector.broadcast %cst_92 : f32 to vector<8x1xf32>
    %236 = arith.addf %232, %235 : vector<8x1xf32>
    %237 = math.rsqrt %236 : vector<8x1xf32>
    %238 = vector.broadcast %237 : vector<8x1xf32> to vector<8x64xf32>
    %239 = arith.mulf %234, %238 : vector<8x64xf32>
    %240 = vector.broadcast %220 : vector<1x64xf32> to vector<8x64xf32>
    %241 = arith.mulf %239, %240 : vector<8x64xf32>
    %242 = vector.broadcast %221 : vector<1x64xf32> to vector<8x64xf32>
    %243 = arith.addf %241, %242 : vector<8x64xf32>
    %c0_93 = arith.constant 0 : index
    %c0_94 = arith.constant 0 : index
    %c0_95 = arith.constant 0 : index
    %244 = vector.load %arg20[%c0_93, %c0_94, %c0_95] : memref<1x8x64xf32, #tpu.memory_space<vmem>>, vector<1x8x64xf32>
    %245 = vector.shape_cast %244 : vector<1x8x64xf32> to vector<8x64xf32>
    %246 = vector.shape_cast %243 : vector<8x64xf32> to vector<1x8x64xf32>
    tpu.vector_store %arg20[%c0_93, %c0_94, %c0_95], %246 {strides = array<i32>} : memref<1x8x64xf32, #tpu.memory_space<vmem>>, vector<1x8x64xf32>,
    return
  }
  func.func @transform_0(%arg0: i32, %arg1: i32) -> (i32, i32, i32) {
    %c0_i32 = arith.constant 0 : i32
    %c0_i32_0 = arith.constant 0 : i32
    return %arg0, %arg1, %c0_i32 : i32, i32, i32
  }
  func.func @transform_1(%arg0: i32, %arg1: i32) -> (i32, i32, i32) {
    %c0_i32 = arith.constant 0 : i32
    %c0_i32_0 = arith.constant 0 : i32
    %c0_i32_1 = arith.constant 0 : i32
    return %arg0, %c0_i32, %c0_i32_0 : i32, i32, i32
  }
  func.func @transform_2(%arg0: i32, %arg1: i32) -> (i32, i32) {
    %c0_i32 = arith.constant 0 : i32
    %c0_i32_0 = arith.constant 0 : i32
    return %arg1, %c0_i32 : i32, i32
  }
  func.func @transform_3(%arg0: i32, %arg1: i32) -> (i32, i32) {
    %c0_i32 = arith.constant 0 : i32
    %c0_i32_0 = arith.constant 0 : i32
    %c0_i32_1 = arith.constant 0 : i32
    return %c0_i32, %c0_i32_0 : i32, i32
  }
  func.func @transform_4(%arg0: i32, %arg1: i32) -> (i32, i32) {
    %c0_i32 = arith.constant 0 : i32
    %c0_i32_0 = arith.constant 0 : i32
    %c0_i32_1 = arith.constant 0 : i32
    return %c0_i32, %c0_i32_0 : i32, i32
  }
  func.func @transform_5(%arg0: i32, %arg1: i32) -> (i32, i32) {
    %c0_i32 = arith.constant 0 : i32
    %c0_i32_0 = arith.constant 0 : i32
    %c0_i32_1 = arith.constant 0 : i32
    return %c0_i32, %c0_i32_0 : i32, i32
  }
  func.func @transform_6(%arg0: i32, %arg1: i32) -> (i32, i32, i32) {
    %c0_i32 = arith.constant 0 : i32
    %c0_i32_0 = arith.constant 0 : i32
    %c0_i32_1 = arith.constant 0 : i32
    %c0_i32_2 = arith.constant 0 : i32
    return %c0_i32, %c0_i32_0, %c0_i32_1 : i32, i32, i32
  }
  func.func @transform_7(%arg0: i32, %arg1: i32) -> (i32, i32) {
    %c0_i32 = arith.constant 0 : i32
    %c0_i32_0 = arith.constant 0 : i32
    %c0_i32_1 = arith.constant 0 : i32
    return %c0_i32, %c0_i32_0 : i32, i32
  }
  func.func @transform_8(%arg0: i32, %arg1: i32) -> (i32, i32) {
    %c0_i32 = arith.constant 0 : i32
    %c0_i32_0 = arith.constant 0 : i32
    %c0_i32_1 = arith.constant 0 : i32
    return %c0_i32, %c0_i32_0 : i32, i32
  }
  func.func @transform_9(%arg0: i32, %arg1: i32) -> (i32, i32) {
    %c0_i32 = arith.constant 0 : i32
    %c0_i32_0 = arith.constant 0 : i32
    %c0_i32_1 = arith.constant 0 : i32
    return %c0_i32, %c0_i32_0 : i32, i32
  }
  func.func @transform_10(%arg0: i32, %arg1: i32) -> (i32, i32) {
    %c0_i32 = arith.constant 0 : i32
    %c0_i32_0 = arith.constant 0 : i32
    %c0_i32_1 = arith.constant 0 : i32
    return %c0_i32, %c0_i32_0 : i32, i32
  }
  func.func @transform_11(%arg0: i32, %arg1: i32) -> (i32, i32) {
    %c0_i32 = arith.constant 0 : i32
    %c0_i32_0 = arith.constant 0 : i32
    %c0_i32_1 = arith.constant 0 : i32
    return %c0_i32, %c0_i32_0 : i32, i32
  }
  func.func @transform_12(%arg0: i32, %arg1: i32) -> (i32, i32) {
    %c0_i32 = arith.constant 0 : i32
    %c0_i32_0 = arith.constant 0 : i32
    %c0_i32_1 = arith.constant 0 : i32
    return %c0_i32, %c0_i32_0 : i32, i32
  }
  func.func @transform_13(%arg0: i32, %arg1: i32) -> (i32, i32) {
    %c0_i32 = arith.constant 0 : i32
    %c0_i32_0 = arith.constant 0 : i32
    %c0_i32_1 = arith.constant 0 : i32
    return %c0_i32, %c0_i32_0 : i32, i32
  }
  func.func @transform_14(%arg0: i32, %arg1: i32) -> (i32, i32) {
    %c0_i32 = arith.constant 0 : i32
    %c0_i32_0 = arith.constant 0 : i32
    %c0_i32_1 = arith.constant 0 : i32
    return %c0_i32, %c0_i32_0 : i32, i32
  }
  func.func @transform_15(%arg0: i32, %arg1: i32) -> (i32, i32) {
    %c0_i32 = arith.constant 0 : i32
    %c0_i32_0 = arith.constant 0 : i32
    %c0_i32_1 = arith.constant 0 : i32
    return %c0_i32, %c0_i32_0 : i32, i32
  }
  func.func @transform_16(%arg0: i32, %arg1: i32) -> (i32, i32) {
    %c0_i32 = arith.constant 0 : i32
    %c0_i32_0 = arith.constant 0 : i32
    %c0_i32_1 = arith.constant 0 : i32
    return %c0_i32, %c0_i32_0 : i32, i32
  }
  func.func @transform_17(%arg0: i32, %arg1: i32) -> (i32, i32) {
    %c0_i32 = arith.constant 0 : i32
    %c0_i32_0 = arith.constant 0 : i32
    %c0_i32_1 = arith.constant 0 : i32
    return %c0_i32, %c0_i32_0 : i32, i32
  }
  func.func @transform_18(%arg0: i32, %arg1: i32) -> (i32, i32, i32) {
    %c0_i32 = arith.constant 0 : i32
    %c0_i32_0 = arith.constant 0 : i32
    return %arg0, %arg1, %c0_i32 : i32, i32, i32
  }
}

</mosaic_0001>

<bundles_post_ra>
// kernel: tpu_custom_call.1
= control target key start
LH: loop header
LB: loop body
LE: loop exit
PB: predicated region body
PF: predicated region fallthrough
CT: control target
= control target key end

     0   :  { %s3479_s0 = inlined_call_operand.vmem [shape: f32[2,8,64], index: 0, kind: input, shape index: {}]   ;;  %s3480_s1 = inlined_call_operand.vmem [shape: f32[2,8,64], index: 1, kind: input, shape index: {}]   ;;  %s3481_s2 = inlined_call_operand.hbm [shape: f32[8,64], index: 2, kind: input, shape index: {}]   ;;  %s3482_s3 = inlined_call_operand.vmem [shape: bf16[8,64], index: 3, kind: input, shape index: {}]   ;;  %s3483_s4 = inlined_call_operand.vmem [shape: bf16[64,64], index: 4, kind: input, shape index: {}]   ;;  %s3484_s5 = inlined_call_operand.vmem [shape: bf16[128,64], index: 5, kind: input, shape index: {}]   ;;  %s3485_s6 = inlined_call_operand.vmem [shape: bf16[4,16,64], index: 6, kind: input, shape index: {}]   ;;  %s3486_s7 = inlined_call_operand.vmem [shape: bf16[64,64], index: 7, kind: input, shape index: {}]   ;;  %s3487_s8 = inlined_call_operand.vmem [shape: f32[1,64], index: 8, kind: input, shape index: {}]   ;;  %s3488_s9 = inlined_call_operand.vmem [shape: f32[1,64], index: 9, kind: input, shape index: {}]   ;;  %s3489_s10 = inlined_call_operand.vmem [shape: f32[1,64], index: 10, kind: input, shape index: {}]   ;;  %s3490_s11 = inlined_call_operand.vmem [shape: f32[1,64], index: 11, kind: input, shape index: {}]   ;;  %s3491_s12 = inlined_call_operand.vmem [shape: bf16[128,64], index: 12, kind: input, shape index: {}]   ;;  %s3492_s13 = inlined_call_operand.vmem [shape: f32[1,128], index: 13, kind: input, shape index: {}]   ;;  %s3493_s14 = inlined_call_operand.vmem [shape: bf16[64,128], index: 14, kind: input, shape index: {}]   ;;  %s3494_s15 = inlined_call_operand.vmem [shape: f32[1,64], index: 15, kind: input, shape index: {}]   ;;  %s3495_s16 = inlined_call_operand.vmem [shape: f32[1,64], index: 16, kind: input, shape index: {}]   ;;  %s3496_s17 = inlined_call_operand.vmem [shape: f32[1,64], index: 17, kind: input, shape index: {}]   ;;  %s3497_s18 = inlined_call_operand.hbm [shape: f32[2,8,64], index: 18, kind: output, shape index: {}]  }
   0x1   :  { %3511 = sst [smem:[#allocation15_spill]] %s3479_s0 }
   0x2   :  { %3512 = sst [smem:[#allocation16_spill]] %s3480_s1 }
   0x3   :  { %3513 = sst [smem:[#allocation17_spill]] %s3481_s2 }
   0x4   :  { %3514 = sst [smem:[#allocation18_spill]] %s3482_s3 }
   0x5   :  { %3515 = sst [smem:[#allocation19_spill]] %s3497_s18 }
   0x6   :  { %23 = vsyncpa [#allocation3], 0 }
   0x7   :  { %24 = vsyncpa [#allocation4], 0 }
   0x8   :  { %26 = vsyncpa [#allocation4 + $0x1], 0  ;;  %s2944_s27 = smov 0   ;;  %s2946_s28 = smov 0  }
   0x9   :  { %s2948_s29 = smov 0   ;;  %s2950_s30 = smov 0  }
   0xa   :  { %s2952_s0 = smov 0   ;;  %s2954_s19 = smov 0  }
   0xb LB: > { %3516 = sst [smem:[#allocation8_spill]] %s2816_s27  ;;  %s2266_s1 = sadd.s32 4294967295, %s2836_s19   ;;  %s2836_s19 = sphi %s2954_s19, %s32_s19   ;;  %s2832_s0 = sphi %s2952_s0, %s3546_s0   ;;  %s2828_s30 = sphi %s2950_s30, %s3542_s30   ;;  %s2824_s29 = sphi %s2948_s29, %s3541_s29   ;;  %s2820_s28 = sphi %s2946_s28, %s3545_s28   ;;  %s2816_s27 = sphi %s2944_s27, %s3544_s27  }
   0xc   : > { %3517 = sst [smem:[#allocation9_spill]] %s2824_s29  ;;  %s2267_s20 = sadd.s32 4294967294, %s2836_s19  }
   0xd   : > { %3518 = sst [smem:[#allocation10_spill]] %s2832_s0  ;;  %s44_s21 = sadd.s32 1, %s2832_s0 }
   0xe   : > { %3519 = sst [smem:[#allocation11_spill]] %s2836_s19  ;;  %s448_s22 = sadd.s32 1, %s2824_s29 }
   0xf   : > { %p46_p0 = scmp.ge.s32.totalorder %s44_s21, 2  ;;  %p458_p1 = scmp.ne.s32.totalorder %s2824_s29, %s2820_s28 }
  0x10   : > { %p459_p2 = scmp.eq.s32.totalorder %s2266_s1, 1  ;;  %p464_p3 = scmp.ne.s32.totalorder %s2820_s28, %s2816_s27 }
  0x11   : > { %s3548_s21 = smov (%p46_p0, %s44_s21), 0  ;;  %p465_p5 = scmp.eq.s32.totalorder %s2267_s20, 1 }
  0x12   : > { %3520 = sst [smem:[#allocation12_spill]] %s3548_s21  ;;  %p2984_p4 = por %p459_p2, %p458_p1 }
  0x13   : > { %s443_s23 = ssub.s32 %s2832_s0, %s3548_s21  ;;  %p2268_p6 = scmp.ge.s32.totalorder %s2836_s19, 1 }
  0x14   : > { %s3521_s2 = scalar_select %p2984_p4, 1, 0 }
  0x15   : > { %p446_p7 = scmp.eq.s32.totalorder %s443_s23, 0  ;;  %p2991_p8 = por %p465_p5, %p464_p3 }
  0x16   : > { %p472_p9 = scmp.lt.s32.totalorder %s2836_s19, 3  ;;  %p3003_p11 = scmp.eq.s32.totalorder %s2266_s1, 0 }
  0x17   : > { %s3522_s24 = scalar_select %p2991_p8, 1, 0 }
  0x18   : > { %s2997_s25 = scalar_select %p446_p7, %s2824_s29, %s448_s22  }
  0x19   : > { %3523 = sst [smem:[#allocation13_spill]] %s3522_s24  ;;  %p2999_p10 = pnand %p2268_p6, %p472_p9 }
  0x1a   : > { %3524 = sst [smem:[#allocation14_spill]] %s2997_s25  ;;  %s2838_s20 = smov [#allocation2]  }
  0x1b   : > { %s3525_s26 = scalar_select %p2999_p10, 1, 0 }
  0x1c   : > { %s3526_s27 = scalar_select %p3003_p11, 1, 0 }
  0x1d   : > { %p2605_p12 = pneg %p2999_p10  ;;  %s487_s23 = sshll.u32 %s2838_s20, 4  ;;  %s488_s23 = int_to_ptr.vmem [resolvable:$true] %s487_s23 }
  0x1e   : > { %s3528_s25 = sld [smem:[#allocation17_spill]] }
  0x1f   : > { %p3011_p13 = pnand %p3003_p11, %p2605_p12 }
  0x21   : > { %p2728_p1 = pneg %p3011_p13 }
  0x24   : > { %s2726_s29 = scalar_lea.hbm %s3528_s25, 128 }
  0x25   : > { %p2727_p0 = scmp.ne.s32.totalorder %s3528_s25, %s2726_s29  ;;  %p2733_p5 = scmp.lt.u32.totalorder %s2726_s29, %s3528_s25 }
  0x27   : > { %p2729_p2 = pnand %p2728_p1, %p2727_p0 }
  0x29   : > { %p2730_p3 = pneg %p2729_p2 }
  0x2b   : > { %p2735_p6 = pnand %p2733_p5, %p2730_p3 }
  0x2d   : > { %2738 = shalt.err (!%p2735_p6)
}
  0x2e   : > { %s2739_s18 = scalar_lea.vmem %s488_s23, 128  ;;  %p2747_p8 = scmp.lt.s32.totalorder %s488_s23, %s488_s23 }
  0x2f   : > { %p2740_p7 = scmp.ne.s32.totalorder %s488_s23, %s2739_s18  ;;  %p2748_p4 = scmp.lt.s32.totalorder %s2739_s18, %s2739_s18 }
  0x31   : > { %p2742_p9 = pnand %p2740_p7, %p2728_p1  ;;  %p2749_p11 = por %p2748_p4, %p2747_p8 }
  0x33   : > { %p2743_p12 = pneg %p2742_p9 }
  0x35   : > { %p2750_p10 = pnand %p2749_p11, %p2743_p12 }
  0x37   : > { %2753 = shalt.err (!%p2750_p10)
}
  0x38   : > { %2608 = dma.hbm_to_vmem [thread:$0]  (!%p3011_p13), %s3528_s25, 128, %s488_s23, [#allocation3]  }
  0x39   : > { %p3529_p0 = scmp.ne.s32.totalorder %s3525_s26, 0 }
  0x3a   : > { %p3530_p2 = scmp.ne.s32.totalorder (!%p3529_p0), %s3526_s27, 0 }
  0x3b   : > { %562 = sbr.rel (%p3529_p0) target bundleno = 5473 (0x1561), region = 92 }
  0x42   : > { %2807 = dma.done.wait (%p3530_p2), [#allocation3], 128  }
  0x43   : > { %2809 = vsyncadd (%p3530_p2), [#allocation3], 4294967168  ;;  %v2839_v0 = vmov 0.0   ;;  %vm2840_vm0 = vmmov 0   ;;  %p622_p4 = scmp.lt.s32.totalorder %s2828_s30, 1  ;;  %vm665_vm1 = vcmask 523264  }
  0x44   : > { %2411 = vmatprep.subr.bf16.mxu0 %v2839_v0  ;;  %2419 = vmatprep.mubr.msk.bf16.mxu0 %vm2840_vm0, %v2839_v0  ;;  %v2674_v1 = vld [vmem:[%s3483_s4] sm:$0xff]   ;;  %v2675_v2 = vld [vmem:[%s3483_s4 + $0x8] sm:$0xff]   ;;  %v2676_v4 = vld [vmem:[%s3483_s4 + $0x10] sm:$0xff]   ;;  %s3531_s18 = sld [smem:[#allocation15_spill]]  ;;  %s2841_s1 = smov 96   ;;  %vm882_vm2 = vcmask 130048  }
  0x45   : > { %2423 = vmatprep.subr.bf16.mxu1 %v2839_v0  ;;  %2439 = vmatprep.mubr.msk.bf16.mxu1 %vm2840_vm0, %v2839_v0  ;;  %s3048_s27 = scalar_select %p622_p4, %s2828_s30, 1  ;;  %v670_v3 = vsel %vm665_vm1, %v2674_v1, 0  ;;  %v673_v5 = vsel %vm665_vm1, %v2675_v2, 0  ;;  %v676_v6 = vsel %vm665_vm1, %v2676_v4, 0  ;;  %v2677_v7 = vld [vmem:[%s3483_s4 + $0x18] sm:$0xff]   ;;  %v2678_v11 = vld [vmem:[%s3485_s6] sm:$0xff]   ;;  %v866_v1 = vlaneseq }
  0x46   : > { %2412 = vmatpush3.bf16.xpose.msra.mxu0 %v670_v3  ;;  %v679_v8 = vsel %vm665_vm1, %v2677_v7, 0  ;;  %v2679_v12 = vld [vmem:[%s3484_s5] sm:$0xff]   ;;  %v2680_v15 = vld [vmem:[%s3484_s5 + $0x8] sm:$0xff]   ;;  %s2842_s24 = smov 32   ;;  %v2681_v17 = vld [vmem:[%s3484_s5 + $0x10] sm:$0xff]   ;;  %s3532_s20 = sld [smem:[#allocation16_spill]] }
  0x47   : > { %2413 = vmatprep.subr.bf16.mxu0 %v2839_v0  ;;  %s2274_s22 = sshll.u32 %s3048_s27, 3  ;;  %v3087_v13 = vld [vmem:[#allocation2] sm:$0xff]  ;;  %v782_v14 = vsel %vm665_vm1, %v2679_v12, 0  ;;  %v785_v16 = vsel %vm665_vm1, %v2680_v15, 0  ;;  %v788_v18 = vsel %vm665_vm1, %v2681_v17, 0  ;;  %v2682_v19 = vld [vmem:[%s3484_s5 + $0x18] sm:$0xff]  }
  0x48   : > { %937 = vrot.lane.b32.xlu0 %v3087_v13, %s2841_s1  ;;  %2424 = vmatpush3.bf16.xpose.msra.mxu1 %v782_v14  ;;  %v791_v20 = vsel %vm665_vm1, %v2682_v19, 0  ;;  %v2683_v21 = vld [vmem:[%s3484_s5 + $0x20] sm:$0xff]   ;;  %v2684_v23 = vld [vmem:[%s3484_s5 + $0x28] sm:$0xff]   ;;  %v2685_v25 = vld [vmem:[%s3484_s5 + $0x30] sm:$0xff]   ;;  %s3533_s3 = sld [smem:[#allocation18_spill]]  ;;  %vm946_vm3 = vcmask 261120  }
  0x49   : > { %2425 = vmatprep.subr.bf16.mxu1 %v2839_v0  ;;  %v794_v22 = vsel %vm665_vm1, %v2683_v21, 0  ;;  %v797_v24 = vsel %vm665_vm1, %v2684_v23, 0  ;;  %v800_v26 = vsel %vm665_vm1, %v2685_v25, 0  ;;  %v2686_v27 = vld [vmem:[%s3484_s5 + $0x38] sm:$0xff]   ;;  %v2291_v31 = vld [vmem:[%s3488_s9] ss:$0 sm:$0xff] }
  0x4a   : > { %s628_s29 = scalar_lea.vmem %s3531_s18, %s2274_s22  ;;  %v803_v28 = vsel %vm665_vm1, %v2686_v27, 0  ;;  %v2290_v61 = vld [vmem:[%s3487_s8] ss:$0 sm:$0xff]  ;;  %v3184_v2 = vshrl.u32 %v866_v1, 7  ;;  %v3186_v3 = vand.u32 127, %v866_v1  ;;  %vm1043_vm5 = vcmask 64512  }
  0x4b   : > { %v3072_v9 = vld [vmem:[%s628_s29] sm:$0xff]  ;;  %s2843_s26 = smov 64   ;;  %vm1062_vm6 = vcmask 1043456   ;;  %s2844_s23 = smov 112   ;;  %v2687_v23 = vld [vmem:[%s3485_s6 + $0x8] sm:$0xff]   ;;  %vm1794_vm7 = vcmask 392192  }
  0x4c   : > { %v636_v10 = vpack.c.bf16 %v3072_v9, %v3072_v9  ;;  %933 = vrot.lane.b32.xlu0 %v3087_v13, %s2842_s24  ;;  %s632_s0 = scalar_lea.vmem %s3532_s20, %s2274_s22  ;;  %vm872_vm4 = vcmp.gt.s32.totalorder %v3186_v3, %v3184_v2  ;;  %s2845_s18 = smov 48  }
  0x4d   : > { %v635_v29 = vld [vmem:[%s632_s0] sm:$0xff]  ;;  %s2846_s22 = smov 80   ;;  %s619_s0 = sand.u32 1, %s2820_s28  }
  0x4e   : > { %2414 = vmatpush3.bf16.xpose.msra.mxu0 %v673_v5  ;;  %v721_v30 = vpack.c.bf16 %v635_v29, %v635_v29  ;;  %v864_v38 = vld [vmem:[%s3533_s3] sm:$0xf]  ;;  %s2273_s29 = sshll.u32 %s619_s0, 3  ;;  %s2343_s21 = sshll.u32 %s2828_s30, 7 }
  0x4f   : > { %2415 = vmatprep.subr.bf16.mxu0 %v2839_v0  ;;  %v3151_v40 = vsel %vm665_vm1, %v864_v38, 0  ;;  %s3534_s20 = sld [smem:[#allocation19_spill]]  ;;  %s2155_s27 = scalar_lea.sflag [#allocation4], %s619_s0 }
  0x50   : > { %2426 = vmatpush3.bf16.xpose.msra.mxu1 %v785_v16  ;;  %p3535_p10 = scmp.ne.s32.totalorder %s3521_s2, 0  ;;  %s2848_s30 = smov [#allocation5]  }
  0x51   : > { %2427 = vmatprep.subr.bf16.mxu1 %v2839_v0 }
  0x55   : > { %s3431_s3 = scalar_lea.hbm %s3534_s20, %s2343_s21 }
  0x56   : > { %2416 = vmatpush3.bf16.xpose.msra.mxu0 %v676_v6 }
  0x57   : > { %2417 = vmatprep.subr.bf16.mxu0 %v2839_v0 }
  0x58   : > { %2428 = vmatpush3.bf16.xpose.msra.mxu1 %v788_v18 }
  0x59   : > { %2429 = vmatprep.subr.bf16.mxu1 %v2839_v0 }
  0x5e   : > { %2418 = vmatpush3.bf16.xpose.msra.mxu0 %v679_v8 }
  0x5f   : > { %2443 = vmatprep.subr.bf16.mxu0 %v2839_v0 }
  0x60   : > { %2430 = vmatpush3.bf16.xpose.msra.mxu1 %v791_v20 }
  0x61   : > { %2431 = vmatprep.subr.bf16.mxu1 %v2839_v0 }
  0x65   : > { %2420 = vmatmul.mubr.msk.bf16.vlgmr.msra.gmra.mrb[0].mxu0 %vm665_vm1, %v636_v10 }
  0x66   : > { %2444 = vmatpush3.bf16.msra.mxu0 %v2678_v11  ;;  %2445 = vmatprep.mubr.msk.bf16.mxu0 %vm2840_vm0, %v2839_v0 }
  0x67   : > { %2449 = vmatprep.subr.bf16.mxu0 %v2839_v0 }
  0x68   : > { %2432 = vmatpush3.bf16.xpose.msra.mxu1 %v794_v22 }
  0x69   : > { %2433 = vmatprep.subr.bf16.mxu1 %v2839_v0 }
  0x70   : > { %2434 = vmatpush3.bf16.xpose.msra.mxu1 %v797_v24 }
  0x71   : > { %2435 = vmatprep.subr.bf16.mxu1 %v2839_v0 }
  0x78   : > { %2436 = vmatpush3.bf16.xpose.msra.mxu1 %v800_v26 }
  0x79   : > { %2437 = vmatprep.subr.bf16.mxu1 %v2839_v0 }
  0x80   : > { %2438 = vmatpush3.bf16.xpose.msra.mxu1 %v803_v28 }
  0x81   : > { %2473 = vmatprep.subr.bf16.mxu1 %v2839_v0 }
  0x87   : > { %2440 = vmatmul.mubr.msk.bf16.vlgmr.msra.gmra.mrb[0].mxu1 %vm665_vm1, %v721_v30 }
  0x88   : > { %2475 = vmatprep.mubr.msk.bf16.mxu1 %vm2840_vm0, %v2839_v0  ;;  %2474 = vmatpush3.bf16.xpose.msra.mxu1 %v3151_v40 }
  0x89   : > { %2479 = vmatprep.subr.bf16.mxu1 %v2839_v0 }
  0xba   : > { %v3159_v49 = vpop.permute.xlu0 %937 }
  0xbe   : > { %v3163_v51 = vpop.permute.xlu0 %933 }
 0x138   : > { %v715_v32 = vpop.f32.mrb[0].mxu0 }
 0x139   : > { %v862_v33 = vadd.f32 %v2291_v31, %v715_v32  ;;  %v2421_v34 = vpop.f32.mrb[1].mxu0  ;;  %v853_v62 = vadd.f32 %v2290_v61, %v715_v32 }
 0x13a   : > { %v718_v35 = vpop.f32.mrb[2].mxu0 }
 0x13b   : > { %v3141_v36 = vpack.c.bf16 %v862_v33, %v862_v33  ;;  %v2422_v37 = vpop.f32.mrb[3].mxu0  ;;  %v3178_v63 = vpack.c.bf16 %v853_v62, %v853_v62 }
 0x13d   : > { %2446 = vmatmul.mubr.msk.bf16.vlgmr.msra.gmra.mrb[4].mxu0 %vm882_vm2, %v3141_v36 }
 0x13e   : > { %2451 = vmatprep.mubr.msk.bf16.mxu0 %vm2840_vm0, %v2839_v0  ;;  %2450 = vmatpush3.bf16.xpose.msra.mxu0 %v3151_v40 }
 0x13f   : > { %2455 = vmatprep.subr.bf16.mxu0 %v2839_v0 }
 0x15a   : > { %v839_v39 = vpop.f32.mrb[0].mxu1 }
 0x15b   : > { %v2441_v41 = vpop.f32.mrb[1].mxu1  ;;  %v3166_v54 = vpack.c.bf16 %v839_v39, %v839_v39 }
 0x15c   : > { %v842_v42 = vpop.f32.mrb[2].mxu1 }
 0x15d   : > { %v2442_v43 = vpop.f32.mrb[3].mxu1  ;;  %v999_v60 = vsel %vm882_vm2, %v3166_v54, 0 }
 0x210   : > { %v920_v44 = vpop.f32.mrb[4].mxu0 }
 0x211   : > { %v2447_v45 = vpop.f32.mrb[5].mxu0  ;;  %v926_v46 = vmul.f32 %v920_v44, %v3087_v13  ;;  %v940_v50 = vmul.f32 %v3159_v49, %v920_v44  ;;  %v936_v53 = vmul.f32 %v3163_v51, %v920_v44 }
 0x212   : > { %v923_v47 = vpop.f32.mrb[6].mxu0 }
 0x213   : > { %928 = vrot.lane.b32.xlu1 %v926_v46, %s2841_s1  ;;  %v2448_v48 = vpop.f32.mrb[7].mxu0 }
 0x217   : > { %942 = vrot.lane.b32.xlu1 %v940_v50, %s2842_s24 }
 0x285   : > { %v929_v52 = vpop.permute.xlu1 %928 }
 0x286   : > { %v931_v56 = vadd.f32 %v929_v52, %v926_v46 }
 0x289   : > { %v943_v55 = vpop.permute.xlu1 %942 }
 0x28a   : > { %v945_v57 = vsub.f32 %v936_v53, %v943_v55 }
 0x28c   : > { %v947_v58 = vsel %vm946_vm3, %v931_v56, %v945_v57 }
 0x28d   : > { %v948_v59 = vpack.c.bf16 %v947_v58, %v947_v58 }
 0x28f   : > { %2452 = vmatmul.mubr.msk.bf16.vlgmr.msra.gmra.mrb[8].mxu0 %vm665_vm1, %v948_v59 }
 0x290   : > { %2456 = vmatpush3.bf16.xpose.msra.mxu0 %v999_v60  ;;  %2457 = vmatprep.mubr.msk.bf16.mxu0 %vm2840_vm0, %v2839_v0 }
 0x291   : > { %2461 = vmatprep.subr.bf16.mxu0 %v2839_v0 }
 0x29b   : > { %2458 = vmatmul.mubr.msk.bf16.vlgmr.msra.gmra.mrb[8].mxu0 %vm882_vm2, %v3178_v63 }
 0x29c   : > { %2463 = vmatprep.mubr.msk.bf16.mxu0 %vm2840_vm0, %v2839_v0 }
 0x36e   : > { %v1035_v4 = vpop.f32.mrb[8].mxu0 }
 0x36f   : > { %v1041_v5 = vmul.f32 0.25, %v1035_v4  ;;  %v2459_v6 = vpop.f32.mrb[9].mxu0 }
 0x370   : > { %v1038_v7 = vpop.f32.mrb[10].mxu0 }
 0x371   : > { %v2460_v8 = vpop.f32.mrb[11].mxu0  ;;  %v1042_v10 = vsel %vm872_vm4, -3.4028235e+38, %v1041_v5 }
 0x372   : > { %v1044_v11 = vsel %vm1043_vm5, %v1042_v10, -inf  ;;  %v2688_v8 = vld [vmem:[%s3485_s6 + $0x10] sm:$0xff]  }
 0x373   : > { %1045 = vmax.xlane.f32.xlu0 %v1044_v11 }
 0x389   : > { %1057 = vrot.lane.b32.xlu0 %v3166_v54, %s2843_s26 }
 0x400   : > { %v1046_v12 = vpop.xlane.xlu0 %1045 }
 0x401   : > { %v1047_v14 = vsub.f32 %v1042_v10, %v1046_v12 }
 0x403   : > { %v1048_v15 = vmul.f32 1.442695, %v1047_v14 }
 0x404   : > { %v1058_v16 = vpop.permute.xlu0 %1057 }
 0x405   : > { %2706 = vpow2.f32 %v1048_v15  ;;  %v1064_v17 = vsel %vm1062_vm6, %v1058_v16, 0 }
 0x406   : > { %2462 = vmatpush3.bf16.msra.mxu0 %v1064_v17 }
 0x407   : > { %2467 = vmatprep.subr.bf16.mxu0 %v2839_v0 }
 0x40f   : > { %v2707_v18 = vpop.eup %2706 }
 0x410   : > { %v1050_v19 = vsel %vm1043_vm5, %v2707_v18, 0.0 }
 0x411   : > { %1051 = vadd.xlane.f32.xlu1 %v1050_v19 }
 0x422   : > { %1110 = vrot.lane.b32.xlu1 %v3141_v36, %s2844_s23 }
 0x49e   : > { %v1052_v20 = vpop.xlane.xlu1 %1051 }
 0x49f   : > { %2708 = vrcp.f32 %v1052_v20 }
 0x4a2   : > { %v1111_v25 = vpop.permute.xlu1 %1110 }
 0x4a9   : > { %v2709_v21 = vpop.eup %2708 }
 0x4aa   : > { %v1054_v22 = vmul.f32 %v2709_v21, %v2707_v18 }
 0x4ac   : > { %v1055_v24 = vpack.c.bf16 %v1054_v22, %v1054_v22 }
 0x4ae   : > { %2464 = vmatmul.mubr.msk.bf16.vlgmr.msra.gmra.mrb[12].mxu0 %vm1043_vm5, %v1055_v24 }
 0x4af   : > { %2468 = vmatpush3.bf16.msra.mxu0 %v2687_v23  ;;  %2469 = vmatprep.mubr.msk.bf16.mxu0 %vm2840_vm0, %v2839_v0 }
 0x4b0   : > { %2485 = vmatprep.subr.bf16.mxu0 %v2839_v0 }
 0x4b6   : > { %2470 = vmatmul.mubr.msk.bf16.vlgmr.msra.gmra.mrb[16].mxu0 %vm882_vm2, %v1111_v25 }
 0x4b7   : > { %2487 = vmatprep.mubr.msk.bf16.mxu0 %vm2840_vm0, %v2839_v0 }
 0x581   : > { %v3209_v26 = vpop.f32.mrb[12].mxu0 }
 0x582   : > { %v2465_v27 = vpop.f32.mrb[13].mxu0 }
 0x583   : > { %v1103_v28 = vpop.f32.mrb[14].mxu0 }
 0x584   : > { %v2466_v29 = vpop.f32.mrb[15].mxu0 }
 0x589   : > { %v1155_v30 = vpop.f32.mrb[16].mxu0 }
 0x58a   : > { %v1161_v31 = vmul.f32 %v1155_v30, %v3087_v13  ;;  %v1168_v32 = vmul.f32 %v1155_v30, %v3159_v49  ;;  %v2471_v33 = vpop.f32.mrb[17].mxu0  ;;  %v1167_v37 = vmul.f32 %v1155_v30, %v3163_v51 }
 0x58b   : > { %v1158_v34 = vpop.f32.mrb[18].mxu0 }
 0x58c   : > { %1170 = vrot.lane.b32.xlu1 %v1168_v32, %s2842_s24  ;;  %1163 = vrot.lane.b32.xlu0 %v1161_v31, %s2841_s1  ;;  %v2472_v35 = vpop.f32.mrb[19].mxu0 }
 0x590   : > { %1220 = vrot.lane.b32.xlu1 %v3178_v63, %s2844_s23  ;;  %1222 = vrot.lane.b32.xlu0 %v3166_v54, %s2844_s23 }
 0x5fe   : > { %v1171_v38 = vpop.permute.xlu1 %1170  ;;  %v1164_v39 = vpop.permute.xlu0 %1163 }
 0x5ff   : > { %v1173_v41 = vsub.f32 %v1167_v37, %v1171_v38  ;;  %v1166_v42 = vadd.f32 %v1164_v39, %v1161_v31 }
 0x601   : > { %v1174_v43 = vsel %vm946_vm3, %v1166_v42, %v1173_v41 }
 0x602   : > { %v1175_v44 = vpack.c.bf16 %v1174_v43, %v1174_v43  ;;  %v1223_v45 = vpop.permute.xlu0 %1222  ;;  %v1221_v47 = vpop.permute.xlu1 %1220 }
 0x603   : > { %v1228_v46 = vsel %vm882_vm2, %v1223_v45, 0 }
 0x604   : > { %2476 = vmatmul.mubr.msk.bf16.vlgmr.msra.gmra.mrb[4].mxu1 %vm665_vm1, %v1175_v44 }
 0x605   : > { %2480 = vmatpush3.bf16.xpose.msra.mxu1 %v1228_v46  ;;  %2481 = vmatprep.mubr.msk.bf16.mxu1 %vm2840_vm0, %v2839_v0 }
 0x606   : > { %2497 = vmatprep.subr.bf16.mxu1 %v2839_v0 }
 0x610   : > { %2482 = vmatmul.mubr.msk.bf16.vlgmr.msra.gmra.mrb[4].mxu1 %vm882_vm2, %v1221_v47 }
 0x611   : > { %2498 = vmatpush3.bf16.xpose.msra.mxu1 %v3151_v40  ;;  %2499 = vmatprep.mubr.msk.bf16.mxu1 %vm2840_vm0, %v2839_v0 }
 0x612   : > { %2503 = vmatprep.subr.bf16.mxu1 %v2839_v0 }
 0x6e3   : > { %v1264_v48 = vpop.f32.mrb[4].mxu1 }
 0x6e4   : > { %v1270_v50 = vmul.f32 0.25, %v1264_v48  ;;  %v2483_v52 = vpop.f32.mrb[5].mxu1 }
 0x6e5   : > { %v1267_v53 = vpop.f32.mrb[6].mxu1 }
 0x6e6   : > { %v2484_v55 = vpop.f32.mrb[7].mxu1  ;;  %v1271_v56 = vsel %vm872_vm4, -3.4028235e+38, %v1270_v50 }
 0x6e7   : > { %v1272_v57 = vsel %vm1043_vm5, %v1271_v56, -inf  ;;  %v2689_v55 = vld [vmem:[%s3485_s6 + $0x18] sm:$0xff]  }
 0x6e8   : > { %1273 = vmax.xlane.f32.xlu0 %v1272_v57 }
 0x6fe   : > { %1284 = vrot.lane.b32.xlu0 %v3166_v54, %s2845_s18 }
 0x775   : > { %v1274_v58 = vpop.xlane.xlu0 %1273 }
 0x776   : > { %v1275_v59 = vsub.f32 %v1271_v56, %v1274_v58 }
 0x778   : > { %v1276_v60 = vmul.f32 1.442695, %v1275_v59 }
 0x779   : > { %v1285_v61 = vpop.permute.xlu0 %1284 }
 0x77a   : > { %2710 = vpow2.f32 %v1276_v60  ;;  %v1290_v62 = vsel %vm1062_vm6, %v1285_v61, 0 }
 0x77b   : > { %2486 = vmatpush3.bf16.msra.mxu0 %v1290_v62 }
 0x77c   : > { %2491 = vmatprep.subr.bf16.mxu0 %v2839_v0 }
 0x784   : > { %v2711_v1 = vpop.eup %2710 }
 0x785   : > { %v1278_v4 = vsel %vm1043_vm5, %v2711_v1, 0.0 }
 0x786   : > { %1279 = vadd.xlane.f32.xlu1 %v1278_v4 }
 0x797   : > { %1335 = vrot.lane.b32.xlu1 %v3141_v36, %s2841_s1 }
 0x813   : > { %v1280_v5 = vpop.xlane.xlu1 %1279 }
 0x814   : > { %2712 = vrcp.f32 %v1280_v5 }
 0x817   : > { %v1336_v11 = vpop.permute.xlu1 %1335 }
 0x81e   : > { %v2713_v6 = vpop.eup %2712 }
 0x81f   : > { %v1282_v7 = vmul.f32 %v2713_v6, %v2711_v1 }
 0x821   : > { %v1283_v10 = vpack.c.bf16 %v1282_v7, %v1282_v7 }
 0x823   : > { %2488 = vmatmul.mubr.msk.bf16.vlgmr.msra.gmra.mrb[20].mxu0 %vm1043_vm5, %v1283_v10 }
 0x824   : > { %2492 = vmatpush3.bf16.msra.mxu0 %v2688_v8  ;;  %2493 = vmatprep.mubr.msk.bf16.mxu0 %vm2840_vm0, %v2839_v0 }
 0x825   : > { %2509 = vmatprep.subr.bf16.mxu0 %v2839_v0 }
 0x82b   : > { %2494 = vmatmul.mubr.msk.bf16.vlgmr.msra.gmra.mrb[24].mxu0 %vm882_vm2, %v1336_v11 }
 0x82c   : > { %2511 = vmatprep.mubr.msk.bf16.mxu0 %vm2840_vm0, %v2839_v0 }
 0x8f6   : > { %v3250_v12 = vpop.f32.mrb[20].mxu0 }
 0x8f7   : > { %v2489_v14 = vpop.f32.mrb[21].mxu0 }
 0x8f8   : > { %v1329_v15 = vpop.f32.mrb[22].mxu0 }
 0x8f9   : > { %v2490_v16 = vpop.f32.mrb[23].mxu0 }
 0x8fe   : > { %v1380_v17 = vpop.f32.mrb[24].mxu0 }
 0x8ff   : > { %v1386_v18 = vmul.f32 %v1380_v17, %v3087_v13  ;;  %v1393_v19 = vmul.f32 %v1380_v17, %v3159_v49  ;;  %v2495_v20 = vpop.f32.mrb[25].mxu0  ;;  %v1392_v23 = vmul.f32 %v1380_v17, %v3163_v51 }
 0x900   : > { %v1383_v21 = vpop.f32.mrb[26].mxu0 }
 0x901   : > { %1395 = vrot.lane.b32.xlu1 %v1393_v19, %s2842_s24  ;;  %1388 = vrot.lane.b32.xlu0 %v1386_v18, %s2841_s1  ;;  %v2496_v22 = vpop.f32.mrb[27].mxu0 }
 0x905   : > { %1444 = vrot.lane.b32.xlu1 %v3178_v63, %s2841_s1  ;;  %1446 = vrot.lane.b32.xlu0 %v3166_v54, %s2841_s1 }
 0x973   : > { %v1396_v24 = vpop.permute.xlu1 %1395  ;;  %v1389_v25 = vpop.permute.xlu0 %1388 }
 0x974   : > { %v1398_v27 = vsub.f32 %v1392_v23, %v1396_v24  ;;  %v1391_v28 = vadd.f32 %v1389_v25, %v1386_v18 }
 0x976   : > { %v1399_v29 = vsel %vm946_vm3, %v1391_v28, %v1398_v27 }
 0x977   : > { %v1400_v30 = vpack.c.bf16 %v1399_v29, %v1399_v29  ;;  %v1447_v31 = vpop.permute.xlu0 %1446  ;;  %v1445_v33 = vpop.permute.xlu1 %1444 }
 0x978   : > { %v1452_v32 = vsel %vm882_vm2, %v1447_v31, 0 }
 0x979   : > { %2500 = vmatmul.mubr.msk.bf16.vlgmr.msra.gmra.mrb[8].mxu1 %vm665_vm1, %v1400_v30 }
 0x97a   : > { %2504 = vmatpush3.bf16.xpose.msra.mxu1 %v1452_v32  ;;  %2505 = vmatprep.mubr.msk.bf16.mxu1 %vm2840_vm0, %v2839_v0  ;;  %v2690_v32 = vld [vmem:[%s3486_s7] sm:$0xff]  }
 0x97b   : > { %2521 = vmatprep.subr.bf16.mxu1 %v2839_v0 }
 0x985   : > { %2506 = vmatmul.mubr.msk.bf16.vlgmr.msra.gmra.mrb[8].mxu1 %vm882_vm2, %v1445_v33  ;;  %v1829_v33 = vsel %vm665_vm1, %v2690_v32, 0 }
 0x986   : > { %2522 = vmatpush3.bf16.xpose.msra.mxu1 %v3151_v40  ;;  %2523 = vmatprep.mubr.msk.bf16.mxu1 %vm2840_vm0, %v2839_v0 }
 0x987   : > { %2527 = vmatprep.subr.bf16.mxu1 %v2839_v0 }
 0xa58   : > { %v1488_v34 = vpop.f32.mrb[8].mxu1 }
 0xa59   : > { %v1494_v35 = vmul.f32 0.25, %v1488_v34  ;;  %v2507_v37 = vpop.f32.mrb[9].mxu1 }
 0xa5a   : > { %v1491_v38 = vpop.f32.mrb[10].mxu1 }
 0xa5b   : > { %v2508_v39 = vpop.f32.mrb[11].mxu1  ;;  %v1495_v41 = vsel %vm872_vm4, -3.4028235e+38, %v1494_v35  ;;  %v2692_v35 = vld [vmem:[%s3486_s7 + $0x10] sm:$0xff]   ;;  %v2693_v38 = vld [vmem:[%s3486_s7 + $0x18] sm:$0xff]  }
 0xa5c   : > { %v1496_v42 = vsel %vm1043_vm5, %v1495_v41, -inf  ;;  %v1835_v37 = vsel %vm665_vm1, %v2692_v35, 0  ;;  %v1838_v39 = vsel %vm665_vm1, %v2693_v38, 0  ;;  %v2335_v35 = vld [vmem:[%s3494_s15] ss:$0 sm:$0xff] }
 0xa5d   : > { %1497 = vmax.xlane.f32.xlu0 %v1496_v42 }
 0xa73   : > { %1508 = vrot.lane.b32.xlu0 %v3166_v54, %s2842_s24 }
 0xaea   : > { %v1498_v40 = vpop.xlane.xlu0 %1497 }
 0xaeb   : > { %v1499_v43 = vsub.f32 %v1495_v41, %v1498_v40 }
 0xaed   : > { %v1500_v44 = vmul.f32 1.442695, %v1499_v43 }
 0xaee   : > { %v1509_v45 = vpop.permute.xlu0 %1508 }
 0xaef   : > { %2714 = vpow2.f32 %v1500_v44  ;;  %v1514_v46 = vsel %vm1062_vm6, %v1509_v45, 0 }
 0xaf0   : > { %2510 = vmatpush3.bf16.msra.mxu0 %v1514_v46 }
 0xaf1   : > { %2515 = vmatprep.subr.bf16.mxu0 %v2839_v0 }
 0xaf9   : > { %v2715_v47 = vpop.eup %2714 }
 0xafa   : > { %v1502_v48 = vsel %vm1043_vm5, %v2715_v47, 0.0 }
 0xafb   : > { %1503 = vadd.xlane.f32.xlu1 %v1502_v48 }
 0xb0c   : > { %1559 = vrot.lane.b32.xlu1 %v3141_v36, %s2846_s22 }
 0xb88   : > { %v1504_v50 = vpop.xlane.xlu1 %1503 }
 0xb89   : > { %2716 = vrcp.f32 %v1504_v50 }
 0xb8c   : > { %v1560_v57 = vpop.permute.xlu1 %1559 }
 0xb93   : > { %v2717_v52 = vpop.eup %2716 }
 0xb94   : > { %v1506_v53 = vmul.f32 %v2717_v52, %v2715_v47 }
 0xb96   : > { %v1507_v56 = vpack.c.bf16 %v1506_v53, %v1506_v53 }
 0xb98   : > { %2512 = vmatmul.mubr.msk.bf16.vlgmr.msra.gmra.mrb[28].mxu0 %vm1043_vm5, %v1507_v56 }
 0xb99   : > { %2516 = vmatpush3.bf16.msra.mxu0 %v2689_v55  ;;  %2517 = vmatprep.mubr.msk.bf16.mxu0 %vm2840_vm0, %v2839_v0 }
 0xb9a   : > { %2533 = vmatprep.subr.bf16.mxu0 %v2839_v0 }
 0xba0   : > { %2518 = vmatmul.mubr.msk.bf16.vlgmr.msra.gmra.mrb[32].mxu0 %vm882_vm2, %v1560_v57 }
 0xba1   : > { %2535 = vmatprep.mubr.msk.bf16.mxu0 %vm2840_vm0, %v2839_v0 }
 0xc6b   : > { %v1550_v36 = vpop.f32.mrb[28].mxu0 }
 0xc6c   : > { %v2513_v58 = vpop.f32.mrb[29].mxu0 }
 0xc6d   : > { %v1553_v59 = vpop.f32.mrb[30].mxu0  ;;  %v2694_v58 = vld [vmem:[%s3491_s12] sm:$0xff]  }
 0xc6e   : > { %v2514_v60 = vpop.f32.mrb[31].mxu0  ;;  %v1979_v59 = vsel %vm665_vm1, %v2694_v58, 0 }
 0xc6f   : > { %v2695_v60 = vld [vmem:[%s3491_s12 + $0x8] sm:$0xff]  }
 0xc73   : > { %v1604_v61 = vpop.f32.mrb[32].mxu0 }
 0xc74   : > { %v1610_v62 = vmul.f32 %v1604_v61, %v3087_v13  ;;  %v1617_v1 = vmul.f32 %v1604_v61, %v3159_v49  ;;  %v2519_v4 = vpop.f32.mrb[33].mxu0  ;;  %v1616_v7 = vmul.f32 %v1604_v61, %v3163_v51  ;;  %v2696_v61 = vld [vmem:[%s3491_s12 + $0x10] sm:$0xff]  }
 0xc75   : > { %v1607_v5 = vpop.f32.mrb[34].mxu0 }
 0xc76   : > { %1619 = vrot.lane.b32.xlu1 %v1617_v1, %s2842_s24  ;;  %1612 = vrot.lane.b32.xlu0 %v1610_v62, %s2841_s1  ;;  %v2520_v6 = vpop.f32.mrb[35].mxu0  ;;  %s2847_s1 = smov 16   ;;  %v2697_v1 = vld [vmem:[%s3491_s12 + $0x18] sm:$0xff]   ;;  %v2698_v5 = vld [vmem:[%s3491_s12 + $0x20] sm:$0xff]  }
 0xc77   : > { %v1988_v4 = vsel %vm665_vm1, %v2697_v1, 0  ;;  %v1991_v6 = vsel %vm665_vm1, %v2698_v5, 0 }
 0xc7a   : > { %1668 = vrot.lane.b32.xlu1 %v3178_v63, %s2846_s22  ;;  %1670 = vrot.lane.b32.xlu0 %v3166_v54, %s2846_s22 }
 0xce8   : > { %v1620_v8 = vpop.permute.xlu1 %1619  ;;  %v1613_v10 = vpop.permute.xlu0 %1612 }
 0xce9   : > { %v1622_v11 = vsub.f32 %v1616_v7, %v1620_v8  ;;  %v1615_v14 = vadd.f32 %v1613_v10, %v1610_v62  ;;  %v1985_v62 = vsel %vm665_vm1, %v2696_v61, 0 }
 0xceb   : > { %v1623_v13 = vsel %vm946_vm3, %v1615_v14, %v1622_v11 }
 0xcec   : > { %v1624_v49 = vpack.c.bf16 %v1623_v13, %v1623_v13  ;;  %v1671_v15 = vpop.permute.xlu0 %1670  ;;  %v1669_v63 = vpop.permute.xlu1 %1668  ;;  %v2699_v13 = vld [vmem:[%s3491_s12 + $0x28] sm:$0xff]  }
 0xced   : > { %v1676_v16 = vsel %vm882_vm2, %v1671_v15, 0  ;;  %v2700_v15 = vld [vmem:[%s3491_s12 + $0x30] sm:$0xff]  }
 0xcee   : > { %2524 = vmatmul.mubr.msk.bf16.vlgmr.msra.gmra.mrb[12].mxu1 %vm665_vm1, %v1624_v49  ;;  %v1994_v49 = vsel %vm665_vm1, %v2699_v13, 0 }
 0xcef   : > { %2528 = vmatpush3.bf16.xpose.msra.mxu1 %v1676_v16  ;;  %2529 = vmatprep.mubr.msk.bf16.mxu1 %vm2840_vm0, %v2839_v0  ;;  %v1997_v16 = vsel %vm665_vm1, %v2700_v15, 0 }
 0xcf0   : > { %2551 = vmatprep.subr.bf16.mxu1 %v2839_v0 }
 0xcfa   : > { %2530 = vmatmul.mubr.msk.bf16.vlgmr.msra.gmra.mrb[12].mxu1 %vm882_vm2, %v1669_v63  ;;  %v2701_v63 = vld [vmem:[%s3491_s12 + $0x38] sm:$0xff]  }
 0xcfb   : > { %2567 = vmatprep.mubr.msk.bf16.mxu1 %vm2840_vm0, %v2839_v0  ;;  %2552 = vmatpush3.bf16.xpose.msra.mxu1 %v1979_v59 }
 0xcfc   : > { %2553 = vmatprep.subr.bf16.mxu1 %v2839_v0 }
 0xdcd   : > { %v1712_v51 = vpop.f32.mrb[12].mxu1 }
 0xdce   : > { %v1718_v17 = vmul.f32 0.25, %v1712_v51  ;;  %v2531_v18 = vpop.f32.mrb[13].mxu1  ;;  %v2000_v51 = vsel %vm665_vm1, %v2701_v63, 0 }
 0xdcf   : > { %v1715_v19 = vpop.f32.mrb[14].mxu1  ;;  %v2703_v18 = vld [vmem:[%s3493_s14 + $0x8] sm:$0xff]  }
 0xdd0   : > { %v2532_v20 = vpop.f32.mrb[15].mxu1  ;;  %v1719_v21 = vsel %vm872_vm4, -3.4028235e+38, %v1718_v17  ;;  %v2702_v17 = vld [vmem:[%s3493_s14] sm:$0xff]   ;;  %v2704_v19 = vld [vmem:[%s3493_s14 + $0x10] sm:$0xff]  }
 0xdd1   : > { %v1720_v22 = vsel %vm1043_vm5, %v1719_v21, -inf }
 0xdd2   : > { %1721 = vmax.xlane.f32.xlu0 %v1720_v22 }
 0xde8   : > { %1732 = vrot.lane.b32.xlu0 %v3166_v54, %s2847_s1 }
 0xdec   : > { %1785 = vrot.lane.b32.xlu0 %v1550_v36, %s2842_s24 }
 0xe5f   : > { %v1722_v23 = vpop.xlane.xlu0 %1721 }
 0xe60   : > { %v1723_v24 = vsub.f32 %v1719_v21, %v1722_v23 }
 0xe62   : > { %v1724_v25 = vmul.f32 1.442695, %v1723_v24  ;;  %v2323_v24 = vld [vmem:[%s3489_s10] ss:$0 sm:$0xff] }
 0xe63   : > { %v1733_v27 = vpop.permute.xlu0 %1732 }
 0xe64   : > { %2718 = vpow2.f32 %v1724_v25  ;;  %v1738_v28 = vsel %vm1062_vm6, %v1733_v27, 0  ;;  %v2324_v27 = vld [vmem:[%s3490_s11] ss:$0 sm:$0xff] }
 0xe65   : > { %2534 = vmatpush3.bf16.msra.mxu0 %v1738_v28 }
 0xe66   : > { %2539 = vmatprep.subr.bf16.mxu0 %v2839_v0 }
 0xe67   : > { %v1786_v46 = vpop.permute.xlu0 %1785 }
 0xe6e   : > { %v2719_v2 = vpop.eup %2718 }
 0xe6f   : > { %v1726_v3 = vsel %vm1043_vm5, %v2719_v2, 0.0 }
 0xe70   : > { %1727 = vadd.xlane.f32.xlu1 %v1726_v3 }
 0xe81   : > { %1781 = vrot.lane.b32.xlu1 %v3250_v12, %s2847_s1  ;;  %v2691_v12 = vld [vmem:[%s3486_s7 + $0x8] sm:$0xff]   ;;  %s621_s1 = scalar_lea.vmem [#allocation5], %s2273_s29  ;;  %s2758_s29 = sshll.u32 %s2848_s30, 4  ;;  %s2759_s29 = int_to_ptr.vmem [resolvable:$false] %s2758_s29 }
 0xe82   : > { %v1832_v34 = vsel %vm665_vm1, %v2691_v12, 0  ;;  %s2169_s24 = sshll.u32 %s621_s1, 4  ;;  %s3433_s24 = int_to_ptr.vmem [resolvable:$true] %s2169_s24 }
 0xe83   : > { %s2754_s22 = scalar_lea.vmem %s3433_s24, 128  ;;  %p2761_p1 = scmp.lt.s32.totalorder %s3433_s24, %s2759_s29 }
 0xe84   : > { %p2755_p8 = scmp.ne.s32.totalorder %s3433_s24, %s2754_s22 }
 0xe86   : > { %p2756_p11 = pnand %p2755_p8, %p3535_p10 }
 0xe88   : > { %p2757_p13 = pneg %p2756_p11 }
 0xefd   : > { %v1728_v29 = vpop.xlane.xlu1 %1727 }
 0xefe   : > { %2720 = vrcp.f32 %v1728_v29  ;;  %v2325_v29 = vld [vmem:[%s3492_s13] ss:$0 sm:$0xff] }
 0xf01   : > { %v1782_v44 = vpop.permute.xlu1 %1781 }
 0xf02   : > { %v1792_v45 = vsel %vm882_vm2, %v3209_v26, %v1782_v44 }
 0xf03   : > { %v1793_v47 = vsel %vm946_vm3, %v1792_v45, %v1786_v46 }
 0xf08   : > { %v2721_v54 = vpop.eup %2720 }
 0xf09   : > { %v1730_v30 = vmul.f32 %v2721_v54, %v2719_v2 }
 0xf0b   : > { %v1731_v31 = vpack.c.bf16 %v1730_v30, %v1730_v30 }
 0xf0d   : > { %2536 = vmatmul.mubr.msk.bf16.vlgmr.msra.gmra.mrb[36].mxu0 %vm1043_vm5, %v1731_v31 }
 0xf0e   : > { %2547 = vmatprep.mubr.msk.bf16.mxu0 %vm2840_vm0, %v2839_v0  ;;  %2540 = vmatpush3.bf16.xpose.msra.mxu0 %v1829_v33 }
 0xf0f   : > { %2541 = vmatprep.subr.bf16.mxu0 %v2839_v0 }
 0xf16   : > { %2542 = vmatpush3.bf16.xpose.msra.mxu0 %v1832_v34 }
 0xf17   : > { %2543 = vmatprep.subr.bf16.mxu0 %v2839_v0 }
 0xf1e   : > { %2544 = vmatpush3.bf16.xpose.msra.mxu0 %v1835_v37 }
 0xf1f   : > { %2545 = vmatprep.subr.bf16.mxu0 %v2839_v0 }
 0xf26   : > { %2546 = vmatpush3.bf16.xpose.msra.mxu0 %v1838_v39 }
 0xf27   : > { %2571 = vmatprep.subr.bf16.mxu0 %v2839_v0 }
 0xfe0   : > { %v1774_v41 = vpop.f32.mrb[36].mxu0 }
 0xfe1   : > { %1789 = vrot.lane.b32.xlu1 %v1774_v41, %s2845_s18  ;;  %v2537_v42 = vpop.f32.mrb[37].mxu0  ;;  %s2760_s18 = scalar_lea.vmem %s2759_s29, 256 }
 0xfe2   : > { %v1777_v40 = vpop.f32.mrb[38].mxu0  ;;  %p2762_p3 = scmp.lt.s32.totalorder %s2760_s18, %s2754_s22 }
 0xfe3   : > { %v2538_v43 = vpop.f32.mrb[39].mxu0 }
 0xfe4   : > { %p2763_p5 = por %p2762_p3, %p2761_p1 }
 0xfe6   : > { %p2764_p6 = pnand %p2763_p5, %p2757_p13 }
0x1053   : > { %v1790_v48 = vpop.permute.xlu1 %1789 }
0x1054   : > { %v1795_v50 = vsel %vm1794_vm7, %v1793_v47, %v1790_v48 }
0x1055   : > { %v1796_v52 = vpack.c.bf16 %v1795_v50, %v1795_v50 }
0x1057   : > { %2548 = vmatmul.mubr.msk.bf16.vlgmr.msra.gmra.mrb[40].mxu0 %vm665_vm1, %v1796_v52 }
0x1058   : > { %2579 = vmatprep.mubr.msk.bf16.mxu0 %vm2840_vm0, %v2839_v0  ;;  %2572 = vmatpush3.bf16.xpose.msra.mxu0 %v2702_v17 }
0x1059   : > { %2573 = vmatprep.subr.bf16.mxu0 %v2839_v0 }
0x1060   : > { %2574 = vmatpush3.bf16.xpose.msra.mxu0 %v2703_v18 }
0x1061   : > { %2575 = vmatprep.subr.bf16.mxu0 %v2839_v0 }
0x1068   : > { %2576 = vmatpush3.bf16.xpose.msra.mxu0 %v2704_v19 }
0x1069   : > { %2577 = vmatprep.subr.bf16.mxu0 %v2839_v0 }
0x112a   : > { %v1874_v53 = vpop.f32.mrb[40].mxu0 }
0x112b   : > { %v1880_v55 = vadd.f32 %v1874_v53, %v3072_v9  ;;  %v2549_v56 = vpop.f32.mrb[41].mxu0  ;;  %v1982_v9 = vsel %vm665_vm1, %v2695_v60, 0 }
0x112c   : > { %v1877_v57 = vpop.f32.mrb[42].mxu0  ;;  %2554 = vmatpush3.bf16.xpose.msra.mxu1 %v1982_v9  ;;  %v2340_v56 = vld [vmem:[%s3495_s16] ss:$0 sm:$0xff] }
0x112d   : > { %v2550_v36 = vpop.f32.mrb[43].mxu0  ;;  %v1883_v26 = vsel %vm665_vm1, %v1880_v55, 0.0  ;;  %2555 = vmatprep.subr.bf16.mxu1 %v2839_v0 }
0x112e   : > { %1884 = vadd.xlane.f32.xlu0 %v1883_v26  ;;  %v2341_v36 = vld [vmem:[%s3496_s17] ss:$0 sm:$0xff] }
0x1134   : > { %2556 = vmatpush3.bf16.xpose.msra.mxu1 %v1985_v62 }
0x1135   : > { %2557 = vmatprep.subr.bf16.mxu1 %v2839_v0 }
0x113c   : > { %2558 = vmatpush3.bf16.xpose.msra.mxu1 %v1988_v4 }
0x113d   : > { %2559 = vmatprep.subr.bf16.mxu1 %v2839_v0 }
0x1144   : > { %2560 = vmatpush3.bf16.xpose.msra.mxu1 %v1991_v6 }
0x1145   : > { %2561 = vmatprep.subr.bf16.mxu1 %v2839_v0 }
0x114c   : > { %2562 = vmatpush3.bf16.xpose.msra.mxu1 %v1994_v49 }
0x114d   : > { %2563 = vmatprep.subr.bf16.mxu1 %v2839_v0 }
0x1154   : > { %2564 = vmatpush3.bf16.xpose.msra.mxu1 %v1997_v16 }
0x1155   : > { %2565 = vmatprep.subr.bf16.mxu1 %v2839_v0  ;;  %v2705_v0 = vld [vmem:[%s3493_s14 + $0x18] sm:$0xff]  }
0x1156   : > { %2578 = vmatpush3.bf16.xpose.msra.mxu0 %v2705_v0 }
0x115c   : > { %2566 = vmatpush3.bf16.xpose.msra.mxu1 %v2000_v51 }
0x11bb   : > { %v1885_v7 = vpop.xlane.xlu0 %1884 }
0x11bc   : > { %v1887_v8 = vmul.f32 0.015625, %v1885_v7 }
0x11be   : > { %v1888_v10 = vsub.f32 %v1880_v55, %v1887_v8 }
0x11c0   : > { %v1889_v11 = vmul.f32 %v1888_v10, %v1888_v10 }
0x11c2   : > { %v1890_v14 = vsel %vm665_vm1, %v1889_v11, 0.0 }
0x11c3   : > { %1891 = vadd.xlane.f32.xlu1 %v1890_v14 }
0x1250   : > { %v1892_v20 = vpop.xlane.xlu1 %1891 }
0x1251   : > { %v1893_v21 = vmul.f32 0.015625, %v1892_v20 }
0x1253   : > { %v1894_v22 = vadd.f32 1e-05, %v1893_v21 }
0x1255   : > { %2722 = vrsqrt.f32 %v1894_v22 }
0x125f   : > { %v2723_v23 = vpop.eup %2722 }
0x1260   : > { %v1896_v25 = vmul.f32 %v2723_v23, %v1888_v10 }
0x1262   : > { %v1903_v28 = vmul.f32 %v2323_v24, %v1896_v25 }
0x1264   : > { %v1910_v2 = vadd.f32 %v2324_v27, %v1903_v28 }
0x1266   : > { %v1911_v3 = vpack.c.bf16 %v1910_v2, %v1910_v2 }
0x1268   : > { %2568 = vmatmul.mubr.msk.bf16.vlgmr.msra.gmra.mrb[16].mxu1 %vm665_vm1, %v1911_v3 }
0x133b   : > { %v2036_v54 = vpop.f32.mrb[16].mxu1 }
0x133c   : > { %v2037_v30 = vadd.f32 %v2325_v29, %v2036_v54  ;;  %v2569_v31 = vpop.f32.mrb[17].mxu1 }
0x133d   : > { %v2039_v32 = vpop.f32.mrb[18].mxu1 }
0x133e   : > { %v2042_v33 = vmax.f32 %v2037_v30, 0.0  ;;  %v2570_v12 = vpop.f32.mrb[19].mxu1 }
0x1340   : > { %v2043_v34 = vpack.c.bf16 %v2042_v33, %v2042_v33 }
0x1342   : > { %2580 = vmatmul.mubr.bf16.vlgmr.msra.gmra.mrb[44].mxu0 %v2043_v34 }
0x1415   : > { %v2117_v37 = vpop.f32.mrb[44].mxu0 }
0x1416   : > { %v2118_v38 = vadd.f32 %v2335_v35, %v2117_v37  ;;  %v2581_v39 = vpop.f32.mrb[45].mxu0 }
0x1417   : > { %v2120_v41 = vpop.f32.mrb[46].mxu0 }
0x1418   : > { %v2582_v42 = vpop.f32.mrb[47].mxu0  ;;  %v2123_v40 = vadd.f32 %v2118_v38, %v1910_v2 }
0x141a   : > { %v2126_v43 = vsel %vm665_vm1, %v2123_v40, 0.0 }
0x141b   : > { %2127 = vadd.xlane.f32.xlu0 %v2126_v43 }
0x14a8   : > { %v2128_v44 = vpop.xlane.xlu0 %2127 }
0x14a9   : > { %v2129_v45 = vmul.f32 0.015625, %v2128_v44 }
0x14ab   : > { %v2130_v46 = vsub.f32 %v2123_v40, %v2129_v45 }
0x14ad   : > { %v2131_v47 = vmul.f32 %v2130_v46, %v2130_v46 }
0x14af   : > { %v2132_v48 = vsel %vm665_vm1, %v2131_v47, 0.0 }
0x14b0   : > { %2133 = vadd.xlane.f32.xlu0 %v2132_v48 }
0x153d   : > { %v2134_v50 = vpop.xlane.xlu0 %2133 }
0x153e   : > { %v2135_v52 = vmul.f32 0.015625, %v2134_v50 }
0x1540   : > { %v2136_v53 = vadd.f32 1e-05, %v2135_v52 }
0x1542   : > { %2724 = vrsqrt.f32 %v2136_v53 }
0x154c   : > { %v2725_v55 = vpop.eup %2724 }
0x154d   : > { %v2138_v57 = vmul.f32 %v2725_v55, %v2130_v46 }
0x154f   : > { %v2145_v26 = vmul.f32 %v2340_v56, %v2138_v57 }
0x1551   : > { %v2152_v58 = vadd.f32 %v2341_v36, %v2145_v26 }
0x1553   : > { %2153 = vst.msk [vmem:[%s621_s1] sm:$0xff] %vm665_vm1, %v2152_v58 }
0x1554   : > { %2767 = shalt.err (!%p2764_p6)
}
0x1555   : > { %s2768_s0 = scalar_lea.hbm %s3431_s3, 128  ;;  %s2772_s1 = scalar_lea.hbm %s3534_s20, 256 }
0x1556   : > { %p2769_p7 = scmp.ne.s32.totalorder %s3431_s3, %s2768_s0  ;;  %p2773_p0 = scmp.lt.u32.totalorder %s3431_s3, %s3534_s20 }
0x1557   : > { %p2774_p2 = scmp.lt.u32.totalorder %s2772_s1, %s2768_s0  ;;  %p2776_p8 = scmp.lt.u32.totalorder %s2768_s0, %s3431_s3 }
0x1558   : > { %p2770_p9 = pnand %p2769_p7, %p3535_p10 }
0x1559   : > { %p2775_p4 = por %p2774_p2, %p2773_p0 }
0x155a   : > { %p2771_p12 = pneg %p2770_p9 }
0x155b   : > { %p2777_p11 = por %p2776_p8, %p2775_p4 }
0x155d   : > { %p2778_p13 = pnand %p2777_p11, %p2771_p12 }
0x155f   : > { %2781 = shalt.err (!%p2778_p13)
}
0x1560   : > { %2603 = dma.vmem_to_hbm [thread:$0]  (%p3535_p10), %s3433_s24, 128, %s3431_s3, %s2155_s27  }
0x1561 PF: > { %s3536_s22 = sld [smem:[#allocation11_spill]]  ;;  %s3537_s30 = sld [smem:[#allocation8_spill]] }
0x1562   : > { %s3538_s29 = sld [smem:[#allocation13_spill]] }
0x1567   : > { %p2615_p1 = scmp.ge.s32.totalorder %s3536_s22, 2  ;;  %s2181_s18 = sand.u32 1, %s3537_s30  }
0x1568   : > { %p3539_p3 = scmp.ne.s32.totalorder %s3538_s29, 0  ;;  %s2182_s19 = scalar_lea.sflag [#allocation4], %s2181_s18 }
0x156a   : > { %p2610_p5 = pnand %p2615_p1, %p3539_p3 }
0x156c   : > { %2811 = dma.done.wait (!%p2610_p5), %s2182_s19, 128  }
0x156d   : > { %2813 = vsyncadd (!%p2610_p5), %s2182_s19, 4294967168  ;;  %s32_s19 = sadd.s32 1, %s3536_s22   ;;  %s3540_s0 = sld [smem:[#allocation9_spill]] }
0x156e   : > { %p29_p6 = scmp.ge.s32.totalorder %s32_s19, 4   ;;  %s3541_s29 = sld [smem:[#allocation14_spill]] }
0x156f   : > { %s3542_s30 = sld [smem:[#allocation10_spill]]  ;;  %s3543_s2 = sld [smem:[#allocation12_spill]] }
0x1570   : > { %s3544_s27 = smov %s2820_s28  ;;  %31 = sbr.rel (!%p29_p6) target bundleno = 11 (0xb), region = 139 }
0x1573   : > { %s3545_s28 = smov %s3540_s0 }
0x1575   : > { %s3546_s0 = smov %s3543_s2 }
0x1577   :  { %2187 = vsyncpa [#allocation3], 1 }
0x1578   :  { %2189 = vsyncpa [#allocation3 + $0x1], 1 }
0x1579   :  { %2190 = vsyncpa [#allocation4], 1 }
0x157a   :  { %2192 = vsyncpa [#allocation4 + $0x1], 1 }

</bundles_post_ra>
